<compile_context>
chip_gen: v6e
topology: v6e:2x2x1
jax: 0.10.0
libtpu: 0.0.40
codegen_flags: <defaults>
</compile_context>

<pallas_src>
import functools
import math

import jax
import jax.numpy as jnp
from jax.experimental import pallas as pl
from jax.experimental.pallas import tpu as pltpu


def _round_up(x, m):
    return ((x + m - 1) // m) * m


# ---------------- fused Pallas kernel ----------------

def _fused_attn_conv_kernel(q_ref, k_ref, v_ref, w2_ref, pattn_ref, out_ref, fh_ref,
                            *, h, w, base, slope):
    """Per grid step (a block of B batches): transposed attention (keys lane-dense) +
    folded 1x1 value embedding + 3x3 conv + LeakyReLU, all in VMEM.

    q_ref:    (B, L2, ck)   pre-scaled query, rows ordered (h, w, t2)
    k_ref:    (B, ck, L)    key, cols ordered (h, w, t)
    v_ref:    (B, L,  c)    raw value (pre-embedding), rows ordered (h, w, t)
    w2_ref:   (9, c, c)     3x3 conv weights per tap, with the 1x1 value embedding folded in
                            (rows = raw value channel, cols = conv output channel)
    pattn_ref:(B, L2, L)    softmax(scores) transposed (lane-dense over keys)
    out_ref:  (B, h*w, c)   conv output, rows ordered (h, w)   (t2 == 1)
    fh_ref:   (B, base + h*w + base, c)  flat halo image scratch (compute dtype)
    """
    hw = h * w
    B = q_ref.shape[0]
    c = w2_ref.shape[-1]
    cdt = q_ref.dtype                      # MXU operand dtype (bf16 fast path / f32 check)

    # ---- scaled dot-product attention (softmax over the key axis = lane axis) ----
    scores = jnp.einsum("bqc,bck->bqk", q_ref[...], k_ref[...],
                        preferred_element_type=jnp.float32)               # (B, L2, L) f32
    m = jnp.max(scores, axis=-1, keepdims=True)
    e = jnp.exp(scores - m)
    s = jnp.sum(e, axis=-1, keepdims=True)
    # approx reciprocal (EUP slot): rows sum to 1 within ~2^-12 relative error.
    p = e * pl.reciprocal(s, approx=True)                                 # (B, L2, L) f32
    pattn_ref[...] = p.astype(pattn_ref.dtype)

    # ---- p @ v (the 1x1 value embedding is folded into the conv weights) ----
    raw = jnp.einsum("bqk,bkc->bqc", p.astype(cdt), v_ref[...],
                     preferred_element_type=jnp.float32)                  # (B, L2, c) f32

    # ---- 3x3 conv (padding=1, bias=False) + LeakyReLU(slope); t2 == 1 so L2 == hw ----
    # Flat halo buffer: row (base + i*w + j) holds pixel (i, j); the `base`-row halos before
    # and after the interior absorb the i-direction padding (zeroed each step, cheap), the
    # j-direction wrap is killed with iota masks.
    tail = fh_ref.shape[1] - (base + hw)
    fh_ref[:, pl.ds(0, base), :] = jnp.zeros((B, base, c), fh_ref.dtype)
    fh_ref[:, pl.ds(base + hw, tail), :] = jnp.zeros((B, tail, c), fh_ref.dtype)
    fh_ref[:, pl.ds(base, hw), :] = raw.astype(fh_ref.dtype)

    col = jax.lax.broadcasted_iota(jnp.int32, (hw, 1), 0) % w
    ml = (col > 0).reshape(1, hw, 1)          # valid when j > 0     (for dj == 0 taps)
    mr = (col < (w - 1)).reshape(1, hw, 1)    # valid when j < w-1   (for dj == 2 taps)

    acc = jnp.zeros((B * hw, c), jnp.float32)
    for di in range(3):
        for dj in range(3):
            start = base + (di - 1) * w + (dj - 1)      # static; dj==1 taps are 8-aligned
            slab = fh_ref[:, pl.ds(start, hw), :]                        # (B, hw, c) cdt
            if dj == 0:
                slab = jnp.where(ml, slab, jnp.zeros_like(slab))
            elif dj == 2:
                slab = jnp.where(mr, slab, jnp.zeros_like(slab))
            acc = acc + jnp.dot(slab.reshape(B * hw, c), w2_ref[di * 3 + dj],
                                preferred_element_type=jnp.float32)
    y = jnp.where(acc >= 0.0, acc, slope * acc)                          # LeakyReLU, f32
    out_ref[...] = y.reshape(B, hw, c).astype(out_ref.dtype)


# ---------------- module forward ----------------

@functools.partial(jax.jit, static_argnames=("compute_dtype", "batch_block"))
def spatial_temporal_attn_block(k, q, v, params, compute_dtype=jnp.bfloat16,
                                batch_block=None):
    n, t, c, h, w = v.shape
    t2 = q.shape[1]
    ck = k.shape[2]
    assert t2 == 1, "module's p_attn.reshape(n, t, h, w, h, w) requires t2 == 1"
    hw = h * w
    L = hw * t
    L2 = hw * t2

    if batch_block is None:
        batch_block = next(b for b in (8, 4, 2, 1) if n % b == 0)
    bb = batch_block
    assert n % bb == 0

    # Host-side relayouts touch the *inputs* only; all intermediates stay in VMEM.
    scale = 1.0 / math.sqrt(ck)
    qT = (q * scale).transpose(0, 3, 4, 1, 2).reshape(n, L2, ck).astype(compute_dtype)
    kT = k.transpose(0, 2, 3, 4, 1).reshape(n, ck, L).astype(compute_dtype)
    vT = v.transpose(0, 3, 4, 1, 2).reshape(n, L, c).astype(compute_dtype)

    # Fold the 1x1 value embedding into the 3x3 conv weights: w2_tap' = wvT @ w2_tap.
    wvT = params["value_w"].reshape(c, c).T                       # (c_in_v, c_emb)
    w2_taps = params["out_w"].transpose(2, 3, 1, 0)               # (3, 3, c_emb, c_out)
    w2f = jnp.einsum("ie,dkeo->dkio", wvT, w2_taps).reshape(9, c, c).astype(compute_dtype)

    base = _round_up(w + 1, 8)                                    # aligned halo offset
    total_rows = base + hw + base

    kernel = functools.partial(_fused_attn_conv_kernel, h=h, w=w, base=base, slope=0.2)

    p_attn_T, out = pl.pallas_call(
        kernel,
        out_shape=(jax.ShapeDtypeStruct((n, L2, L), compute_dtype),
                   jax.ShapeDtypeStruct((n, hw, c), jnp.float32)),
        grid=(n // bb,),
        in_specs=[pl.BlockSpec((bb, L2, ck), lambda b: (b, 0, 0)),
                  pl.BlockSpec((bb, ck, L), lambda b: (b, 0, 0)),
                  pl.BlockSpec((bb, L, c), lambda b: (b, 0, 0)),
                  pl.BlockSpec((9, c, c), lambda b: (0, 0, 0))],
        out_specs=(pl.BlockSpec((bb, L2, L), lambda b: (b, 0, 0)),
                   pl.BlockSpec((bb, hw, c), lambda b: (b, 0, 0))),
        scratch_shapes=[pltpu.VMEM((bb, total_rows, c), compute_dtype)],
        compiler_params=pltpu.CompilerParams(
            dimension_semantics=("parallel",),
            vmem_limit_bytes=32 * 1024 * 1024),
    )(qT, kT, vT, w2f)

    # p_attn back to the torch layout (n, L, L2) then the module's literal reshape.
    _attention = p_attn_T.transpose(0, 2, 1).reshape(n, t, h, w, h, w)
    vout = out.reshape(n, t2, h, w, c).transpose(0, 1, 4, 2, 3)           # (n, t2, c, h, w)
    return vout, k, q, _attention


# ---------------- pure-JAX reference for verification ----------------

def _reference(k, q, v, params):
    n, t, c, h, w = v.shape
    t2 = q.shape[1]
    ck = k.shape[2]
    wv = params["value_w"].reshape(c, c)
    _value = jnp.einsum("ntihw,oi->ntohw", v, wv)
    key_r = k.transpose(0, 2, 3, 4, 1).reshape(n, ck, -1).transpose(0, 2, 1)
    query_r = q.transpose(0, 2, 3, 4, 1).reshape(n, ck, -1)
    value_r = _value.transpose(0, 2, 3, 4, 1).reshape(n, c, -1)
    scores = jnp.einsum("nlc,ncm->nlm", key_r, query_r) / math.sqrt(ck)
    p_attn = jax.nn.softmax(scores, axis=-2)
    p_val = jnp.einsum("ncl,nlm->ncm", value_r, p_attn)
    weighted = p_val.reshape(n, c, h, w, t2).transpose(0, 4, 1, 2, 3)
    x = weighted.reshape(n * t2, c, h, w)
    y = jax.lax.conv_general_dilated(x, params["out_w"], (1, 1), "SAME",
                                     dimension_numbers=("NCHW", "OIHW", "NCHW"))
    y = jnp.where(y >= 0, y, 0.2 * y)
    return y.reshape(n, t2, c, h, w), p_attn.reshape(n, t, h, w, h, w)


if __name__ == "__main__":
    key = jax.random.PRNGKey(0)
    kk_, kq_, kv_, kw1, kw2 = jax.random.split(key, 5)
    n, t, t2 = 2, 4, 1
    d_model, kq_channels = 8, 3
    h = w = 8

    k_in = jax.random.normal(kk_, (n, t, kq_channels, h, w), jnp.float32)
    q_in = jax.random.normal(kq_, (n, t2, kq_channels, h, w), jnp.float32)
    v_in = jax.random.normal(kv_, (n, t, d_model, h, w), jnp.float32)

    # Deterministic synthetic parameters (shapes per the module __init__).
    params = {
        "value_w": jax.random.normal(kw1, (d_model, d_model, 1, 1), jnp.float32) * 0.2,
        "out_w":   jax.random.normal(kw2, (d_model, d_model, 3, 3), jnp.float32) * 0.1,
    }

    v_ref, attn_ref = _reference(k_in, q_in, v_in, params)

    # 1) f32 MXU operands: tight structural/semantic check (only approx-reciprocal noise).
    vout, kout, qout, attn = jax.block_until_ready(
        spatial_temporal_attn_block(k_in, q_in, v_in, params, compute_dtype=jnp.float32))
    assert jnp.allclose(vout, v_ref, rtol=1e-2, atol=1e-2), "v output mismatch (f32)"
    assert jnp.allclose(attn, attn_ref, rtol=1e-2, atol=1e-2), "attention mismatch (f32)"

    # 2) bf16 MXU operands + bf16 p_attn writeback (default fast path): looser tolerance.
    vout_bf, _, _, attn_bf = jax.block_until_ready(
        spatial_temporal_attn_block(k_in, q_in, v_in, params, compute_dtype=jnp.bfloat16))
    assert jnp.allclose(vout_bf, v_ref, rtol=1e-1, atol=1e-1), "v output mismatch (bf16)"
    assert jnp.allclose(attn_bf, attn_ref, rtol=1e-1, atol=1e-1), "attention mismatch (bf16)"

    print("KERNEL_OK")
</pallas_src>

<mosaic_0001>
module attributes {stable_mosaic.version = 11 : i64} {
  func.func @_fused_attn_conv_kernel(%arg0: i32, %arg1: memref<2x64x3xf32, #tpu.memory_space<vmem>>, %arg2: memref<2x3x256xf32, #tpu.memory_space<vmem>>, %arg3: memref<2x256x8xf32, #tpu.memory_space<vmem>>, %arg4: memref<9x8x8xf32, #tpu.memory_space<vmem>>, %arg5: memref<2x64x256xf32, #tpu.memory_space<vmem>>, %arg6: memref<2x64x8xf32, #tpu.memory_space<vmem>>, %arg7: memref<2x96x8xf32, #tpu.memory_space<vmem>>) attributes {dimension_semantics = [#tpu.dimension_semantics<parallel>], iteration_bounds = array<i64: 1>, scalar_prefetch = 0 : i64, scratch_operands = 1 : i64, tpu.core_type = #tpu.core_type<tc>, window_params = [{transform_indices = @transform_0, window_bounds = array<i64: 2, 64, 3>}, {transform_indices = @transform_1, window_bounds = array<i64: 2, 3, 256>}, {transform_indices = @transform_2, window_bounds = array<i64: 2, 256, 8>}, {pipeline_mode = #tpu.pipeline_mode<synchronous>, transform_indices = @transform_3, window_bounds = array<i64: 9, 8, 8>}, {transform_indices = @transform_4, window_bounds = array<i64: 2, 64, 256>}, {transform_indices = @transform_5, window_bounds = array<i64: 2, 64, 8>}]} {
    %c0 = arith.constant 0 : index
    %c0_0 = arith.constant 0 : index
    %c0_1 = arith.constant 0 : index
    %0 = vector.load %arg1[%c0, %c0_0, %c0_1] : memref<2x64x3xf32, #tpu.memory_space<vmem>>, vector<2x64x3xf32>
    %c0_2 = arith.constant 0 : index
    %c0_3 = arith.constant 0 : index
    %c0_4 = arith.constant 0 : index
    %1 = vector.load %arg2[%c0_2, %c0_3, %c0_4] : memref<2x3x256xf32, #tpu.memory_space<vmem>>, vector<2x3x256xf32>
    "tpu.trace_start"() <{level = 10 : i32, message = "bqc,bck->bqk"}> : () -> ()
    %cst = arith.constant dense<0.000000e+00> : vector<2x64x256xf32>
    %2 = tpu.matmul %0, %1, %cst {dimension_numbers = #tpu.dot_dimension_numbers<[2], [1], [1], [2], [0, 0, 0, 1, 1, 2], [0], [0]>} : vector<2x64x3xf32>, vector<2x3x256xf32>, vector<2x64x256xf32> -> vector<2x64x256xf32>
    "tpu.trace_stop"() : () -> ()
    %cst_5 = arith.constant dense<0xFF800000> : vector<2x64xf32>
    %3 = vector.multi_reduction <maximumf>, %2, %cst_5 [2] : vector<2x64x256xf32> to vector<2x64xf32>
    %4 = vector.shape_cast %3 : vector<2x64xf32> to vector<2x64x1xf32>
    %5 = vector.broadcast %4 : vector<2x64x1xf32> to vector<2x64x256xf32>
    %6 = arith.subf %2, %5 : vector<2x64x256xf32>
    %7 = math.exp %6 : vector<2x64x256xf32>
    %cst_6 = arith.constant dense<0.000000e+00> : vector<2x64xf32>
    %8 = vector.multi_reduction <add>, %7, %cst_6 [2] : vector<2x64x256xf32> to vector<2x64xf32>
    %9 = vector.shape_cast %8 : vector<2x64xf32> to vector<2x64x1xf32>
    %10 = tpu.reciprocal %9 {approx = true} : vector<2x64x1xf32> -> vector<2x64x1xf32>
    %11 = vector.broadcast %10 : vector<2x64x1xf32> to vector<2x64x256xf32>
    %12 = arith.mulf %7, %11 : vector<2x64x256xf32>
    %c0_7 = arith.constant 0 : index
    %c0_8 = arith.constant 0 : index
    %c0_9 = arith.constant 0 : index
    %13 = vector.load %arg5[%c0_7, %c0_8, %c0_9] : memref<2x64x256xf32, #tpu.memory_space<vmem>>, vector<2x64x256xf32>
    tpu.vector_store %arg5[%c0_7, %c0_8, %c0_9], %12 {strides = array<i32>} : memref<2x64x256xf32, #tpu.memory_space<vmem>>, vector<2x64x256xf32>,
    %c0_10 = arith.constant 0 : index
    %c0_11 = arith.constant 0 : index
    %c0_12 = arith.constant 0 : index
    %14 = vector.load %arg3[%c0_10, %c0_11, %c0_12] : memref<2x256x8xf32, #tpu.memory_space<vmem>>, vector<2x256x8xf32>
    "tpu.trace_start"() <{level = 10 : i32, message = "bqk,bkc->bqc"}> : () -> ()
    %cst_13 = arith.constant dense<0.000000e+00> : vector<2x64x8xf32>
    %15 = tpu.matmul %12, %14, %cst_13 {dimension_numbers = #tpu.dot_dimension_numbers<[2], [1], [1], [2], [0, 0, 0, 1, 1, 2], [0], [0]>} : vector<2x64x256xf32>, vector<2x256x8xf32>, vector<2x64x8xf32> -> vector<2x64x8xf32>
    %cst_14 = arith.constant 0.000000e+00 : f32
    "tpu.trace_stop"() : () -> ()
    %16 = vector.broadcast %cst_14 : f32 to vector<2x16x8xf32>
    %c0_15 = arith.constant 0 : index
    %c0_16 = arith.constant 0 : index
    %c0_17 = arith.constant 0 : index
    %17 = vector.load %arg7[%c0_15, %c0_16, %c0_17] : memref<2x96x8xf32, #tpu.memory_space<vmem>>, vector<2x16x8xf32>
    tpu.vector_store %arg7[%c0_15, %c0_16, %c0_17], %16 {strides = array<i32>} : memref<2x96x8xf32, #tpu.memory_space<vmem>>, vector<2x16x8xf32>,
    %cst_18 = arith.constant 0.000000e+00 : f32
    %18 = vector.broadcast %cst_18 : f32 to vector<2x16x8xf32>
    %c0_19 = arith.constant 0 : index
    %c80 = arith.constant 80 : index
    %c0_20 = arith.constant 0 : index
    %19 = vector.load %arg7[%c0_19, %c80, %c0_20] : memref<2x96x8xf32, #tpu.memory_space<vmem>>, vector<2x16x8xf32>
    tpu.vector_store %arg7[%c0_19, %c80, %c0_20], %18 {strides = array<i32>} : memref<2x96x8xf32, #tpu.memory_space<vmem>>, vector<2x16x8xf32>,
    %c0_21 = arith.constant 0 : index
    %c16 = arith.constant 16 : index
    %c0_22 = arith.constant 0 : index
    %20 = vector.load %arg7[%c0_21, %c16, %c0_22] : memref<2x96x8xf32, #tpu.memory_space<vmem>>, vector<2x64x8xf32>
    tpu.vector_store %arg7[%c0_21, %c16, %c0_22], %15 {strides = array<i32>} : memref<2x96x8xf32, #tpu.memory_space<vmem>>, vector<2x64x8xf32>,
    %21 = tpu.iota {dimensions = array<i32: 0>} : vector<64x1xi32>
    %c8_i32 = arith.constant 8 : i32
    %c0_i32 = arith.constant 0 : i32
    %22 = arith.cmpi eq, %c8_i32, %c0_i32 : i32
    %c1_i32 = arith.constant 1 : i32
    %23 = arith.select %22, %c1_i32, %c8_i32 : i32
    %24 = vector.broadcast %23 : i32 to vector<64x1xi32>
    %25 = arith.remsi %21, %24 : vector<64x1xi32>
    %c0_i32_23 = arith.constant 0 : i32
    %26 = vector.broadcast %c0_i32_23 : i32 to vector<64x1xi32>
    %27 = arith.cmpi ne, %25, %26 : vector<64x1xi32>
    %c0_i32_24 = arith.constant 0 : i32
    %28 = vector.broadcast %c0_i32_24 : i32 to vector<64x1xi32>
    %29 = arith.cmpi slt, %25, %28 : vector<64x1xi32>
    %c0_i32_25 = arith.constant 0 : i32
    %30 = arith.cmpi slt, %23, %c0_i32_25 : i32
    %31 = vector.broadcast %30 : i1 to vector<64x1xi1>
    %32 = vector.broadcast %31 : vector<64x1xi1> to vector<64x1xi1>
    %33 = arith.xori %29, %32 : vector<64x1xi1>
    %34 = arith.andi %33, %27 : vector<64x1xi1>
    %35 = vector.broadcast %23 : i32 to vector<64x1xi32>
    %36 = arith.addi %25, %35 : vector<64x1xi32>
    %37 = arith.select %34, %36, %25 : vector<64x1xi1>, vector<64x1xi32>
    %c0_i32_26 = arith.constant 0 : i32
    %38 = vector.broadcast %c0_i32_26 : i32 to vector<64x1xi32>
    %39 = arith.cmpi sgt, %37, %38 : vector<64x1xi32>
    %40 = vector.shape_cast %39 : vector<64x1xi1> to vector<1x64x1xi1>
    %c7_i32 = arith.constant 7 : i32
    %41 = vector.broadcast %c7_i32 : i32 to vector<64x1xi32>
    %42 = arith.cmpi slt, %37, %41 : vector<64x1xi32>
    %43 = vector.shape_cast %42 : vector<64x1xi1> to vector<1x64x1xi1>
    %cst_27 = arith.constant 0.000000e+00 : f32
    %44 = vector.broadcast %cst_27 : f32 to vector<128x8xf32>
    %c0_28 = arith.constant 0 : index
    %c7 = arith.constant 7 : index
    %c0_29 = arith.constant 0 : index
    %45 = vector.load %arg7[%c0_28, %c7, %c0_29] : memref<2x96x8xf32, #tpu.memory_space<vmem>>, vector<2x64x8xf32>
    %cst_30 = arith.constant 0.000000e+00 : f32
    %46 = vector.broadcast %cst_30 : f32 to vector<2x64x8xf32>
    %47 = vector.shape_cast %40 : vector<1x64x1xi1> to vector<1x64x1xi1>
    %48 = vector.broadcast %47 : vector<1x64x1xi1> to vector<2x64x8xi1>
    %49 = arith.select %48, %45, %46 : vector<2x64x8xi1>, vector<2x64x8xf32>
    %50 = vector.shape_cast %49 : vector<2x64x8xf32> to vector<128x8xf32>
    %c0_31 = arith.constant 0 : index
    %c0_32 = arith.constant 0 : index
    %c0_33 = arith.constant 0 : index
    %51 = vector.load %arg4[%c0_31, %c0_32, %c0_33] : memref<9x8x8xf32, #tpu.memory_space<vmem>>, vector<1x8x8xf32>
    %52 = vector.shape_cast %51 : vector<1x8x8xf32> to vector<8x8xf32>
    %cst_34 = arith.constant dense<0.000000e+00> : vector<128x8xf32>
    %53 = tpu.matmul %50, %52, %cst_34 {dimension_numbers = #tpu.dot_dimension_numbers<[1], [0], [0], [1], [0, 0, 1, 1], [], []>} : vector<128x8xf32>, vector<8x8xf32>, vector<128x8xf32> -> vector<128x8xf32>
    %54 = arith.addf %44, %53 : vector<128x8xf32>
    %c0_35 = arith.constant 0 : index
    %c8 = arith.constant 8 : index
    %c0_36 = arith.constant 0 : index
    %55 = vector.load %arg7[%c0_35, %c8, %c0_36] : memref<2x96x8xf32, #tpu.memory_space<vmem>>, vector<2x64x8xf32>
    %56 = vector.shape_cast %55 : vector<2x64x8xf32> to vector<128x8xf32>
    %c1 = arith.constant 1 : index
    %c0_37 = arith.constant 0 : index
    %c0_38 = arith.constant 0 : index
    %57 = vector.load %arg4[%c1, %c0_37, %c0_38] : memref<9x8x8xf32, #tpu.memory_space<vmem>>, vector<1x8x8xf32>
    %58 = vector.shape_cast %57 : vector<1x8x8xf32> to vector<8x8xf32>
    %cst_39 = arith.constant dense<0.000000e+00> : vector<128x8xf32>
    %59 = tpu.matmul %56, %58, %cst_39 {dimension_numbers = #tpu.dot_dimension_numbers<[1], [0], [0], [1], [0, 0, 1, 1], [], []>} : vector<128x8xf32>, vector<8x8xf32>, vector<128x8xf32> -> vector<128x8xf32>
    %60 = arith.addf %54, %59 : vector<128x8xf32>
    %c0_40 = arith.constant 0 : index
    %c9 = arith.constant 9 : index
    %c0_41 = arith.constant 0 : index
    %61 = vector.load %arg7[%c0_40, %c9, %c0_41] : memref<2x96x8xf32, #tpu.memory_space<vmem>>, vector<2x64x8xf32>
    %cst_42 = arith.constant 0.000000e+00 : f32
    %62 = vector.broadcast %cst_42 : f32 to vector<2x64x8xf32>
    %63 = vector.shape_cast %43 : vector<1x64x1xi1> to vector<1x64x1xi1>
    %64 = vector.broadcast %63 : vector<1x64x1xi1> to vector<2x64x8xi1>
    %65 = arith.select %64, %61, %62 : vector<2x64x8xi1>, vector<2x64x8xf32>
    %66 = vector.shape_cast %65 : vector<2x64x8xf32> to vector<128x8xf32>
    %c2 = arith.constant 2 : index
    %c0_43 = arith.constant 0 : index
    %c0_44 = arith.constant 0 : index
    %67 = vector.load %arg4[%c2, %c0_43, %c0_44] : memref<9x8x8xf32, #tpu.memory_space<vmem>>, vector<1x8x8xf32>
    %68 = vector.shape_cast %67 : vector<1x8x8xf32> to vector<8x8xf32>
    %cst_45 = arith.constant dense<0.000000e+00> : vector<128x8xf32>
    %69 = tpu.matmul %66, %68, %cst_45 {dimension_numbers = #tpu.dot_dimension_numbers<[1], [0], [0], [1], [0, 0, 1, 1], [], []>} : vector<128x8xf32>, vector<8x8xf32>, vector<128x8xf32> -> vector<128x8xf32>
    %70 = arith.addf %60, %69 : vector<128x8xf32>
    %c0_46 = arith.constant 0 : index
    %c15 = arith.constant 15 : index
    %c0_47 = arith.constant 0 : index
    %71 = vector.load %arg7[%c0_46, %c15, %c0_47] : memref<2x96x8xf32, #tpu.memory_space<vmem>>, vector<2x64x8xf32>
    %cst_48 = arith.constant 0.000000e+00 : f32
    %72 = vector.broadcast %cst_48 : f32 to vector<2x64x8xf32>
    %73 = vector.shape_cast %40 : vector<1x64x1xi1> to vector<1x64x1xi1>
    %74 = vector.broadcast %73 : vector<1x64x1xi1> to vector<2x64x8xi1>
    %75 = arith.select %74, %71, %72 : vector<2x64x8xi1>, vector<2x64x8xf32>
    %76 = vector.shape_cast %75 : vector<2x64x8xf32> to vector<128x8xf32>
    %c3 = arith.constant 3 : index
    %c0_49 = arith.constant 0 : index
    %c0_50 = arith.constant 0 : index
    %77 = vector.load %arg4[%c3, %c0_49, %c0_50] : memref<9x8x8xf32, #tpu.memory_space<vmem>>, vector<1x8x8xf32>
    %78 = vector.shape_cast %77 : vector<1x8x8xf32> to vector<8x8xf32>
    %cst_51 = arith.constant dense<0.000000e+00> : vector<128x8xf32>
    %79 = tpu.matmul %76, %78, %cst_51 {dimension_numbers = #tpu.dot_dimension_numbers<[1], [0], [0], [1], [0, 0, 1, 1], [], []>} : vector<128x8xf32>, vector<8x8xf32>, vector<128x8xf32> -> vector<128x8xf32>
    %80 = arith.addf %70, %79 : vector<128x8xf32>
    %c0_52 = arith.constant 0 : index
    %c16_53 = arith.constant 16 : index
    %c0_54 = arith.constant 0 : index
    %81 = vector.load %arg7[%c0_52, %c16_53, %c0_54] : memref<2x96x8xf32, #tpu.memory_space<vmem>>, vector<2x64x8xf32>
    %82 = vector.shape_cast %81 : vector<2x64x8xf32> to vector<128x8xf32>
    %c4 = arith.constant 4 : index
    %c0_55 = arith.constant 0 : index
    %c0_56 = arith.constant 0 : index
    %83 = vector.load %arg4[%c4, %c0_55, %c0_56] : memref<9x8x8xf32, #tpu.memory_space<vmem>>, vector<1x8x8xf32>
    %84 = vector.shape_cast %83 : vector<1x8x8xf32> to vector<8x8xf32>
    %cst_57 = arith.constant dense<0.000000e+00> : vector<128x8xf32>
    %85 = tpu.matmul %82, %84, %cst_57 {dimension_numbers = #tpu.dot_dimension_numbers<[1], [0], [0], [1], [0, 0, 1, 1], [], []>} : vector<128x8xf32>, vector<8x8xf32>, vector<128x8xf32> -> vector<128x8xf32>
    %86 = arith.addf %80, %85 : vector<128x8xf32>
    %c0_58 = arith.constant 0 : index
    %c17 = arith.constant 17 : index
    %c0_59 = arith.constant 0 : index
    %87 = vector.load %arg7[%c0_58, %c17, %c0_59] : memref<2x96x8xf32, #tpu.memory_space<vmem>>, vector<2x64x8xf32>
    %cst_60 = arith.constant 0.000000e+00 : f32
    %88 = vector.broadcast %cst_60 : f32 to vector<2x64x8xf32>
    %89 = vector.shape_cast %43 : vector<1x64x1xi1> to vector<1x64x1xi1>
    %90 = vector.broadcast %89 : vector<1x64x1xi1> to vector<2x64x8xi1>
    %91 = arith.select %90, %87, %88 : vector<2x64x8xi1>, vector<2x64x8xf32>
    %92 = vector.shape_cast %91 : vector<2x64x8xf32> to vector<128x8xf32>
    %c5 = arith.constant 5 : index
    %c0_61 = arith.constant 0 : index
    %c0_62 = arith.constant 0 : index
    %93 = vector.load %arg4[%c5, %c0_61, %c0_62] : memref<9x8x8xf32, #tpu.memory_space<vmem>>, vector<1x8x8xf32>
    %94 = vector.shape_cast %93 : vector<1x8x8xf32> to vector<8x8xf32>
    %cst_63 = arith.constant dense<0.000000e+00> : vector<128x8xf32>
    %95 = tpu.matmul %92, %94, %cst_63 {dimension_numbers = #tpu.dot_dimension_numbers<[1], [0], [0], [1], [0, 0, 1, 1], [], []>} : vector<128x8xf32>, vector<8x8xf32>, vector<128x8xf32> -> vector<128x8xf32>
    %96 = arith.addf %86, %95 : vector<128x8xf32>
    %c0_64 = arith.constant 0 : index
    %c23 = arith.constant 23 : index
    %c0_65 = arith.constant 0 : index
    %97 = vector.load %arg7[%c0_64, %c23, %c0_65] : memref<2x96x8xf32, #tpu.memory_space<vmem>>, vector<2x64x8xf32>
    %cst_66 = arith.constant 0.000000e+00 : f32
    %98 = vector.broadcast %cst_66 : f32 to vector<2x64x8xf32>
    %99 = vector.shape_cast %40 : vector<1x64x1xi1> to vector<1x64x1xi1>
    %100 = vector.broadcast %99 : vector<1x64x1xi1> to vector<2x64x8xi1>
    %101 = arith.select %100, %97, %98 : vector<2x64x8xi1>, vector<2x64x8xf32>
    %102 = vector.shape_cast %101 : vector<2x64x8xf32> to vector<128x8xf32>
    %c6 = arith.constant 6 : index
    %c0_67 = arith.constant 0 : index
    %c0_68 = arith.constant 0 : index
    %103 = vector.load %arg4[%c6, %c0_67, %c0_68] : memref<9x8x8xf32, #tpu.memory_space<vmem>>, vector<1x8x8xf32>
    %104 = vector.shape_cast %103 : vector<1x8x8xf32> to vector<8x8xf32>
    %cst_69 = arith.constant dense<0.000000e+00> : vector<128x8xf32>
    %105 = tpu.matmul %102, %104, %cst_69 {dimension_numbers = #tpu.dot_dimension_numbers<[1], [0], [0], [1], [0, 0, 1, 1], [], []>} : vector<128x8xf32>, vector<8x8xf32>, vector<128x8xf32> -> vector<128x8xf32>
    %106 = arith.addf %96, %105 : vector<128x8xf32>
    %c0_70 = arith.constant 0 : index
    %c24 = arith.constant 24 : index
    %c0_71 = arith.constant 0 : index
    %107 = vector.load %arg7[%c0_70, %c24, %c0_71] : memref<2x96x8xf32, #tpu.memory_space<vmem>>, vector<2x64x8xf32>
    %108 = vector.shape_cast %107 : vector<2x64x8xf32> to vector<128x8xf32>
    %c7_72 = arith.constant 7 : index
    %c0_73 = arith.constant 0 : index
    %c0_74 = arith.constant 0 : index
    %109 = vector.load %arg4[%c7_72, %c0_73, %c0_74] : memref<9x8x8xf32, #tpu.memory_space<vmem>>, vector<1x8x8xf32>
    %110 = vector.shape_cast %109 : vector<1x8x8xf32> to vector<8x8xf32>
    %cst_75 = arith.constant dense<0.000000e+00> : vector<128x8xf32>
    %111 = tpu.matmul %108, %110, %cst_75 {dimension_numbers = #tpu.dot_dimension_numbers<[1], [0], [0], [1], [0, 0, 1, 1], [], []>} : vector<128x8xf32>, vector<8x8xf32>, vector<128x8xf32> -> vector<128x8xf32>
    %112 = arith.addf %106, %111 : vector<128x8xf32>
    %c0_76 = arith.constant 0 : index
    %c25 = arith.constant 25 : index
    %c0_77 = arith.constant 0 : index
    %113 = vector.load %arg7[%c0_76, %c25, %c0_77] : memref<2x96x8xf32, #tpu.memory_space<vmem>>, vector<2x64x8xf32>
    %cst_78 = arith.constant 0.000000e+00 : f32
    %114 = vector.broadcast %cst_78 : f32 to vector<2x64x8xf32>
    %115 = vector.shape_cast %43 : vector<1x64x1xi1> to vector<1x64x1xi1>
    %116 = vector.broadcast %115 : vector<1x64x1xi1> to vector<2x64x8xi1>
    %117 = arith.select %116, %113, %114 : vector<2x64x8xi1>, vector<2x64x8xf32>
    %118 = vector.shape_cast %117 : vector<2x64x8xf32> to vector<128x8xf32>
    %c8_79 = arith.constant 8 : index
    %c0_80 = arith.constant 0 : index
    %c0_81 = arith.constant 0 : index
    %119 = vector.load %arg4[%c8_79, %c0_80, %c0_81] : memref<9x8x8xf32, #tpu.memory_space<vmem>>, vector<1x8x8xf32>
    %120 = vector.shape_cast %119 : vector<1x8x8xf32> to vector<8x8xf32>
    %cst_82 = arith.constant dense<0.000000e+00> : vector<128x8xf32>
    %121 = tpu.matmul %118, %120, %cst_82 {dimension_numbers = #tpu.dot_dimension_numbers<[1], [0], [0], [1], [0, 0, 1, 1], [], []>} : vector<128x8xf32>, vector<8x8xf32>, vector<128x8xf32> -> vector<128x8xf32>
    %122 = arith.addf %112, %121 : vector<128x8xf32>
    %cst_83 = arith.constant 0.000000e+00 : f32
    %123 = vector.broadcast %cst_83 : f32 to vector<128x8xf32>
    %124 = arith.cmpf oge, %122, %123 : vector<128x8xf32>
    %cst_84 = arith.constant 2.000000e-01 : f32
    %125 = vector.broadcast %cst_84 : f32 to vector<128x8xf32>
    %126 = arith.mulf %125, %122 : vector<128x8xf32>
    %127 = arith.select %124, %122, %126 : vector<128x8xi1>, vector<128x8xf32>
    %128 = vector.shape_cast %127 : vector<128x8xf32> to vector<2x64x8xf32>
    %c0_85 = arith.constant 0 : index
    %c0_86 = arith.constant 0 : index
    %c0_87 = arith.constant 0 : index
    %129 = vector.load %arg6[%c0_85, %c0_86, %c0_87] : memref<2x64x8xf32, #tpu.memory_space<vmem>>, vector<2x64x8xf32>
    tpu.vector_store %arg6[%c0_85, %c0_86, %c0_87], %128 {strides = array<i32>} : memref<2x64x8xf32, #tpu.memory_space<vmem>>, vector<2x64x8xf32>,
    return
  }
  func.func @transform_0(%arg0: i32) -> (i32, i32, i32) {
    %c0_i32 = arith.constant 0 : i32
    %c0_i32_0 = arith.constant 0 : i32
    %c0_i32_1 = arith.constant 0 : i32
    return %arg0, %c0_i32, %c0_i32_0 : i32, i32, i32
  }
  func.func @transform_1(%arg0: i32) -> (i32, i32, i32) {
    %c0_i32 = arith.constant 0 : i32
    %c0_i32_0 = arith.constant 0 : i32
    %c0_i32_1 = arith.constant 0 : i32
    return %arg0, %c0_i32, %c0_i32_0 : i32, i32, i32
  }
  func.func @transform_2(%arg0: i32) -> (i32, i32, i32) {
    %c0_i32 = arith.constant 0 : i32
    %c0_i32_0 = arith.constant 0 : i32
    %c0_i32_1 = arith.constant 0 : i32
    return %arg0, %c0_i32, %c0_i32_0 : i32, i32, i32
  }
  func.func @transform_3(%arg0: i32) -> (i32, i32, i32) {
    %c0_i32 = arith.constant 0 : i32
    %c0_i32_0 = arith.constant 0 : i32
    %c0_i32_1 = arith.constant 0 : i32
    %c0_i32_2 = arith.constant 0 : i32
    return %c0_i32, %c0_i32_0, %c0_i32_1 : i32, i32, i32
  }
  func.func @transform_4(%arg0: i32) -> (i32, i32, i32) {
    %c0_i32 = arith.constant 0 : i32
    %c0_i32_0 = arith.constant 0 : i32
    %c0_i32_1 = arith.constant 0 : i32
    return %arg0, %c0_i32, %c0_i32_0 : i32, i32, i32
  }
  func.func @transform_5(%arg0: i32) -> (i32, i32, i32) {
    %c0_i32 = arith.constant 0 : i32
    %c0_i32_0 = arith.constant 0 : i32
    %c0_i32_1 = arith.constant 0 : i32
    return %arg0, %c0_i32, %c0_i32_0 : i32, i32, i32
  }
}

</mosaic_0001>

<bundles_post_ra>
// kernel: spatial_temporal_attn_block.1
= control target key start
LH: loop header
LB: loop body
LE: loop exit
PB: predicated region body
PF: predicated region fallthrough
CT: control target
= control target key end

     0   :  { %vm64_vm0 = vcmask 1042432   ;;  %v3999_v2 = vmov 0.0   ;;  %vm39_vm1 = vcmask 23552   ;;  %vm871_vm2 = vcmask 64512   ;;  %s5753_s1 = inlined_call_operand.vmem [shape: f32[2,3,256], index: 1, kind: input, shape index: {}]   ;;  %s5754_s0 = inlined_call_operand.vmem [shape: f32[2,64,3], index: 0, kind: input, shape index: {}]   ;;  %s5755_s2 = inlined_call_operand.vmem [shape: f32[2,256,8], index: 2, kind: input, shape index: {}]   ;;  %s5756_s3 = inlined_call_operand.vmem [shape: f32[9,8,8], index: 3, kind: input, shape index: {}]   ;;  %s5757_s4 = inlined_call_operand.vmem [shape: f32[2,64,256], index: 4, kind: output, shape index: {0}]   ;;  %s5758_s5 = inlined_call_operand.vmem [shape: f32[2,64,8], index: 5, kind: output, shape index: {1}]  }
   0x1   :  { %v35_v0 = vld [vmem:[%s5753_s1] sm:$0x77]  ;;  %v36_v1 = vld [vmem:[%s5753_s1 + $0x8] sm:$0x77]  ;;  %133 = vmatprep.mubr.f32.mxu0 %v3999_v2  ;;  %276 = vmatprep.mubr.f32.mxu1 %v3999_v2  ;;  %v21_v9 = vld [vmem:[%s5754_s0 + $0x10] sm:$0xff]  ;;  %872 = vst.msk [vmem:[#allocation2] sm:$0xff] %vm871_vm2, %v3999_v2 }
   0x2   :  { %v38_v3 = vcombine.high %v35_v0, %v35_v0  ;;  %v183_v4 = vcombine.high %v36_v1, %v36_v1  ;;  %v19_v5 = vld [vmem:[%s5754_s0] sm:$0xff]  ;;  %v20_v7 = vld [vmem:[%s5754_s0 + $0x8] sm:$0xff]  ;;  %v29_v10 = vld [vmem:[%s5754_s0 + $0x50] sm:$0xff]  ;;  %873 = vst.msk [vmem:[#allocation2 + $0x8] sm:$0xff] %vm871_vm2, %v3999_v2 }
   0x3   :  { %v27_v6 = vld [vmem:[%s5754_s0 + $0x40] sm:$0xff]  ;;  %v28_v8 = vld [vmem:[%s5754_s0 + $0x48] sm:$0xff]  ;;  %v22_v11 = vld [vmem:[%s5754_s0 + $0x18] sm:$0xff]  ;;  %874 = vst.msk [vmem:[#allocation2 + $0x60] sm:$0xff] %vm871_vm2, %v3999_v2 }
   0x4   :  { %3227 = vmatprep.subr.msk.mxu0 %vm64_vm0, %v38_v3  ;;  %3237 = vmatprep.subr.msk.mxu1 %vm64_vm0, %v183_v4  ;;  %v30_v12 = vld [vmem:[%s5754_s0 + $0x58] sm:$0xff]  ;;  %v23_v13 = vld [vmem:[%s5754_s0 + $0x20] sm:$0xff]  ;;  %v24_v15 = vld [vmem:[%s5754_s0 + $0x28] sm:$0xff]  ;;  %875 = vst.msk [vmem:[#allocation2 + $0x68] sm:$0xff] %vm871_vm2, %v3999_v2 }
   0x5   :  { %3228 = vmatpush1.msk.msra.mxu0 %vm64_vm0, %v35_v0  ;;  %3238 = vmatpush1.msk.msra.mxu1 %vm64_vm0, %v36_v1  ;;  %v31_v14 = vld [vmem:[%s5754_s0 + $0x60] sm:$0xff]  ;;  %v32_v16 = vld [vmem:[%s5754_s0 + $0x68] sm:$0xff]  ;;  %v25_v17 = vld [vmem:[%s5754_s0 + $0x30] sm:$0xff]  ;;  %876 = vst.msk [vmem:[#allocation2 + $0x50] sm:$0xff] %vm871_vm2, %v3999_v2 }
   0x6   :  { %3229 = vmatmul.mubr.msk.f32.vlgmr.msra.gmra.mxu0 %vm39_vm1, %v19_v5  ;;  %3239 = vmatmul.mubr.msk.f32.vlgmr.msra.gmra.mxu1 %vm39_vm1, %v27_v6  ;;  %v33_v18 = vld [vmem:[%s5754_s0 + $0x70] sm:$0xff]  ;;  %v26_v19 = vld [vmem:[%s5754_s0 + $0x38] sm:$0xff]  ;;  %877 = vst.msk [vmem:[#allocation2 + $0x58] sm:$0xff] %vm871_vm2, %v3999_v2  ;;  %878 = vst.msk [vmem:[#allocation2 + $0xb0] sm:$0xff] %vm871_vm2, %v3999_v2 }
   0x7   :  { %139 = vmatprep.mubr.f32.mxu0 %v3999_v2  ;;  %282 = vmatprep.mubr.f32.mxu1 %v3999_v2  ;;  %v34_v20 = vld [vmem:[%s5754_s0 + $0x78] sm:$0xff]  ;;  %879 = vst.msk [vmem:[#allocation2 + $0xb8] sm:$0xff] %vm871_vm2, %v3999_v2 }
   0x8   :  { %v660_v6 = vld [vmem:[%s5755_s2 + $0x1f8] sm:$0xff] }
   0x9   :  { %3455 = vmatprep.subr.mxu1 %v660_v6 }
   0xa   :  { %3230 = vmatmul.mubr.msk.f32.gmra.mxu0 %vm39_vm1, %v20_v7  ;;  %3240 = vmatmul.mubr.msk.f32.gmra.mxu1 %vm39_vm1, %v28_v8  ;;  %v644_v7 = vld [vmem:[%s5755_s2 + $0x178] sm:$0xff]  ;;  %v659_v8 = vld [vmem:[%s5755_s2 + $0x1f0] sm:$0xff] }
   0xb   :  { %145 = vmatprep.mubr.f32.mxu0 %v3999_v2  ;;  %288 = vmatprep.mubr.f32.mxu1 %v3999_v2 }
   0xc   :  { %3456 = vmatpush3.msra.mxu1 %v644_v7 }
   0xd   :  { %3457 = vmatprep.subr.mxu1 %v659_v8 }
   0xe   :  { %3231 = vmatmul.mubr.msk.f32.gmra.mxu0 %vm39_vm1, %v21_v9  ;;  %3241 = vmatmul.mubr.msk.f32.gmra.mxu1 %vm39_vm1, %v29_v10  ;;  %v628_v9 = vld [vmem:[%s5755_s2 + $0xf8] sm:$0xff]  ;;  %v643_v10 = vld [vmem:[%s5755_s2 + $0x170] sm:$0xff] }
   0xf   :  { %151 = vmatprep.mubr.f32.mxu0 %v3999_v2  ;;  %294 = vmatprep.mubr.f32.mxu1 %v3999_v2 }
  0x10   :  { %3399 = vmatprep.subr.mxu0 %v628_v9  ;;  %3458 = vmatpush3.msra.mxu1 %v643_v10 }
  0x12   :  { %3232 = vmatmul.mubr.msk.f32.gmra.mxu0 %vm39_vm1, %v22_v11  ;;  %3242 = vmatmul.mubr.msk.f32.gmra.mxu1 %vm39_vm1, %v30_v12  ;;  %v612_v11 = vld [vmem:[%s5755_s2 + $0x78] sm:$0xff]  ;;  %v658_v12 = vld [vmem:[%s5755_s2 + $0x1e8] sm:$0xff] }
  0x13   :  { %157 = vmatprep.mubr.f32.mxu0 %v3999_v2  ;;  %300 = vmatprep.mubr.f32.mxu1 %v3999_v2 }
  0x14   :  { %3400 = vmatpush3.msra.mxu0 %v612_v11  ;;  %3459 = vmatprep.subr.mxu1 %v658_v12 }
  0x16   :  { %3233 = vmatmul.mubr.msk.f32.gmra.mxu0 %vm39_vm1, %v23_v13  ;;  %3243 = vmatmul.mubr.msk.f32.gmra.mxu1 %vm39_vm1, %v31_v14  ;;  %v627_v13 = vld [vmem:[%s5755_s2 + $0xf0] sm:$0xff]  ;;  %v642_v14 = vld [vmem:[%s5755_s2 + $0x168] sm:$0xff] }
  0x17   :  { %163 = vmatprep.mubr.f32.mxu0 %v3999_v2  ;;  %306 = vmatprep.mubr.f32.mxu1 %v3999_v2 }
  0x18   :  { %3401 = vmatprep.subr.mxu0 %v627_v13  ;;  %3460 = vmatpush3.msra.mxu1 %v642_v14 }
  0x1a   :  { %3234 = vmatmul.mubr.msk.f32.gmra.mxu0 %vm39_vm1, %v24_v15  ;;  %3244 = vmatmul.mubr.msk.f32.gmra.mxu1 %vm39_vm1, %v32_v16  ;;  %v611_v15 = vld [vmem:[%s5755_s2 + $0x70] sm:$0xff]  ;;  %v626_v16 = vld [vmem:[%s5755_s2 + $0xe8] sm:$0xff] }
  0x1b   :  { %169 = vmatprep.mubr.f32.mxu0 %v3999_v2  ;;  %312 = vmatprep.mubr.f32.mxu1 %v3999_v2 }
  0x1c   :  { %3402 = vmatpush3.msra.mxu0 %v611_v15 }
  0x1d   :  { %3403 = vmatprep.subr.mxu0 %v626_v16 }
  0x1e   :  { %3235 = vmatmul.mubr.msk.f32.gmra.mxu0 %vm39_vm1, %v25_v17  ;;  %3245 = vmatmul.mubr.msk.f32.gmra.mxu1 %vm39_vm1, %v33_v18  ;;  %v657_v17 = vld [vmem:[%s5755_s2 + $0x1e0] sm:$0xff]  ;;  %v610_v18 = vld [vmem:[%s5755_s2 + $0x68] sm:$0xff] }
  0x1f   :  { %175 = vmatprep.mubr.f32.mxu0 %v3999_v2  ;;  %318 = vmatprep.mubr.f32.mxu1 %v3999_v2 }
  0x20   :  { %3461 = vmatprep.subr.mxu1 %v657_v17  ;;  %3404 = vmatpush3.msra.mxu0 %v610_v18 }
  0x22   :  { %3236 = vmatmul.mubr.msk.f32.gmra.mxu0 %vm39_vm1, %v26_v19  ;;  %3246 = vmatmul.mubr.msk.f32.gmra.mxu1 %vm39_vm1, %v34_v20  ;;  %v641_v19 = vld [vmem:[%s5755_s2 + $0x160] sm:$0xff] }
  0x23   :  { %v625_v20 = vld [vmem:[%s5755_s2 + $0xe0] sm:$0xff]  ;;  %3462 = vmatpush3.msra.mxu1 %v641_v19 }
  0x24   :  { %3405 = vmatprep.subr.mxu0 %v625_v20 }
  0xc6   :  { %v4116_v21 = vpop.f32.mrf.mxu0  ;;  %v4118_v22 = vpop.f32.mrf.mxu1 }
  0xc8   :  { %v4120_v23 = vpop.f32.mrf.mxu0  ;;  %v4122_v24 = vpop.f32.mrf.mxu1 }
  0xc9   :  { %v349_v25 = vmax.f32 %v4118_v22, %v4122_v24  ;;  %v325_v31 = vmax.f32 %v4116_v21, %v4120_v23 }
  0xca   :  { %v4126_v26 = vpop.f32.mrf.mxu0  ;;  %v4128_v27 = vpop.f32.mrf.mxu1 }
  0xcb   :  { %350 = vmax.xlane.f32.xlu0 %v349_v25  ;;  %v656_v25 = vld [vmem:[%s5755_s2 + $0x1d8] sm:$0xff] }
  0xcc   :  { %v4130_v28 = vpop.f32.mrf.mxu0  ;;  %v4132_v29 = vpop.f32.mrf.mxu1  ;;  %3463 = vmatprep.subr.mxu1 %v656_v25 }
  0xcd   :  { %v352_v30 = vmax.f32 %v4128_v27, %v4132_v29  ;;  %v328_v37 = vmax.f32 %v4126_v26, %v4130_v28 }
  0xce   :  { %v4138_v32 = vpop.f32.mrf.mxu0  ;;  %v4140_v33 = vpop.f32.mrf.mxu1 }
  0xcf   :  { %353 = vmax.xlane.f32.xlu1 %v352_v30  ;;  %326 = vmax.xlane.f32.xlu0 %v325_v31  ;;  %v609_v30 = vld [vmem:[%s5755_s2 + $0x60] sm:$0xff]  ;;  %v640_v31 = vld [vmem:[%s5755_s2 + $0x158] sm:$0xff] }
  0xd0   :  { %v4142_v34 = vpop.f32.mrf.mxu0  ;;  %v4144_v35 = vpop.f32.mrf.mxu1  ;;  %3406 = vmatpush3.msra.mxu0 %v609_v30  ;;  %3464 = vmatpush3.msra.mxu1 %v640_v31 }
  0xd1   :  { %v355_v36 = vmax.f32 %v4140_v33, %v4144_v35  ;;  %v331_v43 = vmax.f32 %v4138_v32, %v4142_v34 }
  0xd2   :  { %v4150_v38 = vpop.f32.mrf.mxu0  ;;  %v4152_v39 = vpop.f32.mrf.mxu1 }
  0xd3   :  { %356 = vmax.xlane.f32.xlu0 %v355_v36  ;;  %329 = vmax.xlane.f32.xlu1 %v328_v37  ;;  %v624_v36 = vld [vmem:[%s5755_s2 + $0xd8] sm:$0xff]  ;;  %v655_v37 = vld [vmem:[%s5755_s2 + $0x1d0] sm:$0xff] }
  0xd4   :  { %v4154_v40 = vpop.f32.mrf.mxu0  ;;  %v4156_v41 = vpop.f32.mrf.mxu1  ;;  %3407 = vmatprep.subr.mxu0 %v624_v36  ;;  %3465 = vmatprep.subr.mxu1 %v655_v37 }
  0xd5   :  { %v358_v42 = vmax.f32 %v4152_v39, %v4156_v41  ;;  %v334_v49 = vmax.f32 %v4150_v38, %v4154_v40 }
  0xd6   :  { %v4162_v44 = vpop.f32.mrf.mxu0  ;;  %v4164_v45 = vpop.f32.mrf.mxu1 }
  0xd7   :  { %359 = vmax.xlane.f32.xlu0 %v358_v42  ;;  %332 = vmax.xlane.f32.xlu1 %v331_v43  ;;  %v608_v42 = vld [vmem:[%s5755_s2 + $0x58] sm:$0xff]  ;;  %v639_v43 = vld [vmem:[%s5755_s2 + $0x150] sm:$0xff] }
  0xd8   :  { %v4166_v46 = vpop.f32.mrf.mxu0  ;;  %v4168_v47 = vpop.f32.mrf.mxu1  ;;  %3408 = vmatpush3.msra.mxu0 %v608_v42  ;;  %3466 = vmatpush3.msra.mxu1 %v639_v43 }
  0xd9   :  { %v361_v48 = vmax.f32 %v4164_v45, %v4168_v47  ;;  %v337_v55 = vmax.f32 %v4162_v44, %v4166_v46 }
  0xda   :  { %v4174_v50 = vpop.f32.mrf.mxu0  ;;  %v4176_v51 = vpop.f32.mrf.mxu1 }
  0xdb   :  { %362 = vmax.xlane.f32.xlu0 %v361_v48  ;;  %335 = vmax.xlane.f32.xlu1 %v334_v49  ;;  %v623_v48 = vld [vmem:[%s5755_s2 + $0xd0] sm:$0xff]  ;;  %v654_v49 = vld [vmem:[%s5755_s2 + $0x1c8] sm:$0xff] }
  0xdc   :  { %v4178_v52 = vpop.f32.mrf.mxu0  ;;  %v4180_v53 = vpop.f32.mrf.mxu1  ;;  %3409 = vmatprep.subr.mxu0 %v623_v48  ;;  %3467 = vmatprep.subr.mxu1 %v654_v49 }
  0xdd   :  { %v364_v54 = vmax.f32 %v4176_v51, %v4180_v53  ;;  %v340_v61 = vmax.f32 %v4174_v50, %v4178_v52 }
  0xde   :  { %v4186_v56 = vpop.f32.mrf.mxu0  ;;  %v4188_v57 = vpop.f32.mrf.mxu1 }
  0xdf   :  { %365 = vmax.xlane.f32.xlu0 %v364_v54  ;;  %338 = vmax.xlane.f32.xlu1 %v337_v55  ;;  %v607_v54 = vld [vmem:[%s5755_s2 + $0x50] sm:$0xff]  ;;  %v638_v55 = vld [vmem:[%s5755_s2 + $0x148] sm:$0xff] }
  0xe0   :  { %v4190_v58 = vpop.f32.mrf.mxu0  ;;  %v4192_v59 = vpop.f32.mrf.mxu1  ;;  %3410 = vmatpush3.msra.mxu0 %v607_v54  ;;  %3468 = vmatpush3.msra.mxu1 %v638_v55 }
  0xe1   :  { %v367_v60 = vmax.f32 %v4188_v57, %v4192_v59  ;;  %v343_v3 = vmax.f32 %v4186_v56, %v4190_v58 }
  0xe2   :  { %v4198_v62 = vpop.f32.mrf.mxu0  ;;  %v4200_v63 = vpop.f32.mrf.mxu1 }
  0xe3   :  { %368 = vmax.xlane.f32.xlu0 %v367_v60  ;;  %341 = vmax.xlane.f32.xlu1 %v340_v61  ;;  %v653_v60 = vld [vmem:[%s5755_s2 + $0x1c0] sm:$0xff] }
  0xe4   :  { %v4202_v0 = vpop.f32.mrf.mxu0  ;;  %v4204_v1 = vpop.f32.mrf.mxu1  ;;  %3469 = vmatprep.subr.mxu1 %v653_v60 }
  0xe5   :  { %v346_v4 = vmax.f32 %v4198_v62, %v4202_v0  ;;  %v370_v5 = vmax.f32 %v4200_v63, %v4204_v1 }
  0xe7   :  { %344 = vmax.xlane.f32.xlu1 %v343_v3  ;;  %347 = vmax.xlane.f32.xlu0 %v346_v4 }
  0xeb   :  { %371 = vmax.xlane.f32.xlu1 %v370_v5 }
 0x154   :  { %v351_v61 = vpop.xlane.xlu0 %350 }
 0x155   :  { %v389_v3 = vsub.f32 %v4118_v22, %v351_v61  ;;  %v390_v4 = vsub.f32 %v4122_v24, %v351_v61 }
 0x157   :  { %v437_v5 = vmul.f32 1.442695, %v389_v3  ;;  %v439_v6 = vmul.f32 1.442695, %v390_v4 }
 0x158   :  { %v354_v7 = vpop.xlane.xlu1 %353  ;;  %v327_v8 = vpop.xlane.xlu0 %326 }
 0x159   :  { %3903 = vpow2.f32 %v437_v5  ;;  %v391_v9 = vsub.f32 %v4128_v27, %v354_v7  ;;  %v392_v10 = vsub.f32 %v4132_v29, %v354_v7  ;;  %v373_v11 = vsub.f32 %v4116_v21, %v327_v8 }
 0x15a   :  { %3905 = vpow2.f32 %v439_v6  ;;  %v374_v12 = vsub.f32 %v4120_v23, %v327_v8 }
 0x15b   :  { %v441_v13 = vmul.f32 1.442695, %v391_v9  ;;  %v443_v14 = vmul.f32 1.442695, %v392_v10  ;;  %v405_v15 = vmul.f32 1.442695, %v373_v11 }
 0x15c   :  { %v407_v22 = vmul.f32 1.442695, %v374_v12  ;;  %v357_v16 = vpop.xlane.xlu0 %356  ;;  %v330_v24 = vpop.xlane.xlu1 %329 }
 0x15d   :  { %3907 = vpow2.f32 %v441_v13  ;;  %v393_v17 = vsub.f32 %v4140_v33, %v357_v16  ;;  %v394_v18 = vsub.f32 %v4144_v35, %v357_v16  ;;  %v375_v27 = vsub.f32 %v4126_v26, %v330_v24 }
 0x15e   :  { %3909 = vpow2.f32 %v443_v14  ;;  %v376_v29 = vsub.f32 %v4130_v28, %v330_v24 }
 0x15f   :  { %3911 = vpow2.f32 %v405_v15  ;;  %v445_v21 = vmul.f32 1.442695, %v393_v17  ;;  %v447_v19 = vmul.f32 1.442695, %v394_v18  ;;  %v409_v23 = vmul.f32 1.442695, %v375_v27 }
 0x160   :  { %3913 = vpow2.f32 %v407_v22  ;;  %v411_v20 = vmul.f32 1.442695, %v376_v29  ;;  %v360_v25 = vpop.xlane.xlu0 %359  ;;  %v333_v30 = vpop.xlane.xlu1 %332 }
 0x161   :  { %3915 = vpow2.f32 %v445_v21  ;;  %v395_v31 = vsub.f32 %v4152_v39, %v360_v25  ;;  %v396_v33 = vsub.f32 %v4156_v41, %v360_v25  ;;  %v377_v35 = vsub.f32 %v4138_v32, %v333_v30 }
 0x162   :  { %3917 = vpow2.f32 %v447_v19  ;;  %v378_v26 = vsub.f32 %v4142_v34, %v333_v30 }
 0x163   :  { %3919 = vpow2.f32 %v409_v23  ;;  %v449_v28 = vmul.f32 1.442695, %v395_v31  ;;  %v451_v36 = vmul.f32 1.442695, %v396_v33  ;;  %v413_v37 = vmul.f32 1.442695, %v377_v35 }
 0x164   :  { %3921 = vpow2.f32 %v411_v20  ;;  %v415_v42 = vmul.f32 1.442695, %v378_v26  ;;  %v363_v43 = vpop.xlane.xlu0 %362  ;;  %v336_v48 = vpop.xlane.xlu1 %335 }
 0x165   :  { %3923 = vpow2.f32 %v449_v28  ;;  %v397_v49 = vsub.f32 %v4164_v45, %v363_v43  ;;  %v398_v39 = vsub.f32 %v4168_v47, %v363_v43  ;;  %v379_v41 = vsub.f32 %v4150_v38, %v336_v48  ;;  %v637_v43 = vld [vmem:[%s5755_s2 + $0x140] sm:$0xff] }
 0x166   :  { %v4310_v54 = vpop.eup %3903  ;;  %3925 = vpow2.f32 %v451_v36  ;;  %v380_v32 = vsub.f32 %v4154_v40, %v336_v48  ;;  %v606_v48 = vld [vmem:[%s5755_s2 + $0x48] sm:$0xff]  ;;  %3470 = vmatpush3.msra.mxu1 %v637_v43 }
 0x167   :  { %v4313_v34 = vpop.eup %3905  ;;  %3927 = vpow2.f32 %v413_v37  ;;  %v453_v55 = vmul.f32 1.442695, %v397_v49  ;;  %v455_v60 = vmul.f32 1.442695, %v398_v39  ;;  %v417_v61 = vmul.f32 1.442695, %v379_v41 }
 0x168   :  { %3929 = vpow2.f32 %v415_v42  ;;  %v419_v3 = vmul.f32 1.442695, %v380_v32  ;;  %v366_v4 = vpop.xlane.xlu0 %365  ;;  %v339_v5 = vpop.xlane.xlu1 %338  ;;  %v493_v45 = vadd.f32 %v4313_v34, %v4310_v54  ;;  %v652_v32 = vld [vmem:[%s5755_s2 + $0x1b8] sm:$0xff] }
 0x169   :  { %3931 = vpow2.f32 %v453_v55  ;;  %v399_v38 = vsub.f32 %v4176_v51, %v366_v4  ;;  %v400_v47 = vsub.f32 %v4180_v53, %v366_v4  ;;  %v381_v40 = vsub.f32 %v4162_v44, %v339_v5  ;;  %v621_v55 = vld [vmem:[%s5755_s2 + $0xc0] sm:$0xff]  ;;  %3471 = vmatprep.subr.mxu1 %v652_v32 }
 0x16a   :  { %v4320_v6 = vpop.eup %3907  ;;  %3933 = vpow2.f32 %v455_v60  ;;  %v382_v7 = vsub.f32 %v4166_v46, %v339_v5  ;;  %494 = vadd.xlane.f32.xlu0 %v493_v45  ;;  %v636_v60 = vld [vmem:[%s5755_s2 + $0x138] sm:$0xff] }
 0x16b   :  { %v4323_v8 = vpop.eup %3909  ;;  %3935 = vpow2.f32 %v417_v61  ;;  %v457_v9 = vmul.f32 1.442695, %v399_v38  ;;  %v459_v10 = vmul.f32 1.442695, %v400_v47  ;;  %v421_v11 = vmul.f32 1.442695, %v381_v40  ;;  %3472 = vmatpush3.msra.mxu1 %v636_v60 }
 0x16c   :  { %v4325_v12 = vpop.eup %3911  ;;  %3937 = vpow2.f32 %v419_v3  ;;  %v423_v51 = vmul.f32 1.442695, %v382_v7  ;;  %v369_v13 = vpop.xlane.xlu0 %368  ;;  %v496_v44 = vadd.f32 %v4323_v8, %v4320_v6  ;;  %v651_v3 = vld [vmem:[%s5755_s2 + $0x1b0] sm:$0xff]  ;;  %v630_v60 = vld [vmem:[%s5755_s2 + $0x108] sm:$0xff] }
 0x16d   :  { %v342_v53 = vpop.xlane.xlu1 %341  ;;  %v4329_v14 = vpop.eup %3913  ;;  %3939 = vpow2.f32 %v457_v9  ;;  %v401_v46 = vsub.f32 %v4188_v57, %v369_v13  ;;  %v402_v15 = vsub.f32 %v4192_v59, %v369_v13  ;;  %3473 = vmatprep.subr.mxu1 %v651_v3  ;;  %v635_v7 = vld [vmem:[%s5755_s2 + $0x130] sm:$0xff]  ;;  %v650_v13 = vld [vmem:[%s5755_s2 + $0x1a8] sm:$0xff] }
 0x16e   :  { %v383_v22 = vsub.f32 %v4174_v50, %v342_v53  ;;  %v4334_v16 = vpop.eup %3915  ;;  %3941 = vpow2.f32 %v459_v10  ;;  %v384_v24 = vsub.f32 %v4178_v52, %v342_v53  ;;  %v469_v17 = vadd.f32 %v4329_v14, %v4325_v12  ;;  %497 = vadd.xlane.f32.xlu0 %v496_v44  ;;  %3474 = vmatpush3.msra.mxu1 %v635_v7  ;;  %v619_v44 = vld [vmem:[%s5755_s2 + $0xb0] sm:$0xff]  ;;  %v614_v7 = vld [vmem:[%s5755_s2 + $0x88] sm:$0xff] }
 0x16f   :  { %v4339_v18 = vpop.eup %3917  ;;  %3943 = vpow2.f32 %v421_v11  ;;  %v461_v27 = vmul.f32 1.442695, %v401_v46  ;;  %v463_v29 = vmul.f32 1.442695, %v402_v15  ;;  %v620_v11 = vld [vmem:[%s5755_s2 + $0xb8] sm:$0xff]  ;;  %3475 = vmatprep.subr.mxu1 %v650_v13  ;;  %v634_v46 = vld [vmem:[%s5755_s2 + $0x128] sm:$0xff] }
 0x170   :  { %v425_v21 = vmul.f32 1.442695, %v383_v22  ;;  %v4341_v57 = vpop.eup %3919  ;;  %3945 = vpow2.f32 %v423_v51  ;;  %v427_v59 = vmul.f32 1.442695, %v384_v24  ;;  %470 = vadd.xlane.f32.xlu1 %v469_v17  ;;  %v348_v19 = vpop.xlane.xlu0 %347  ;;  %v499_v52 = vadd.f32 %v4339_v18, %v4334_v16  ;;  %v604_v51 = vld [vmem:[%s5755_s2 + $0x38] sm:$0xff]  ;;  %v603_v15 = vld [vmem:[%s5755_s2 + $0x30] sm:$0xff]  ;;  %3476 = vmatpush3.msra.mxu1 %v634_v46 }
 0x171   :  { %v345_v50 = vpop.xlane.xlu1 %344  ;;  %v4345_v23 = vpop.eup %3921  ;;  %3947 = vpow2.f32 %v461_v27  ;;  %v387_v30 = vsub.f32 %v4198_v62, %v348_v19  ;;  %v388_v33 = vsub.f32 %v4202_v0, %v348_v19  ;;  %v622_v0 = vld [vmem:[%s5755_s2 + $0xc8] sm:$0xff]  ;;  %v649_v17 = vld [vmem:[%s5755_s2 + $0x1a0] sm:$0xff] }
 0x172   :  { %v385_v20 = vsub.f32 %v4186_v56, %v345_v50  ;;  %v386_v25 = vsub.f32 %v4190_v58, %v345_v50  ;;  %v4350_v31 = vpop.eup %3923  ;;  %3949 = vpow2.f32 %v463_v29  ;;  %v472_v35 = vadd.f32 %v4345_v23, %v4341_v57  ;;  %500 = vadd.xlane.f32.xlu0 %v499_v52  ;;  %3411 = vmatprep.subr.mxu0 %v622_v0  ;;  %v633_v29 = vld [vmem:[%s5755_s2 + $0x120] sm:$0xff]  ;;  %v618_v50 = vld [vmem:[%s5755_s2 + $0xa8] sm:$0xff]  ;;  %v648_v52 = vld [vmem:[%s5755_s2 + $0x198] sm:$0xff] }
 0x173   :  { %v4355_v26 = vpop.eup %3925  ;;  %3951 = vpow2.f32 %v425_v21  ;;  %v433_v37 = vmul.f32 1.442695, %v387_v30  ;;  %v435_v58 = vmul.f32 1.442695, %v388_v33  ;;  %3412 = vmatpush3.msra.mxu0 %v606_v48  ;;  %v602_v19 = vld [vmem:[%s5755_s2 + $0x28] sm:$0xff]  ;;  %3477 = vmatprep.subr.mxu1 %v649_v17  ;;  %v631_v0 = vld [vmem:[%s5755_s2 + $0x110] sm:$0xff] }
 0x174   :  { %v429_v28 = vmul.f32 1.442695, %v385_v20  ;;  %v431_v36 = vmul.f32 1.442695, %v386_v25  ;;  %v4357_v56 = vpop.eup %3927  ;;  %3953 = vpow2.f32 %v427_v59  ;;  %473 = vadd.xlane.f32.xlu1 %v472_v35  ;;  %v502_v42 = vadd.f32 %v4355_v26, %v4350_v31  ;;  %3413 = vmatprep.subr.mxu0 %v621_v55  ;;  %v617_v25 = vld [vmem:[%s5755_s2 + $0xa0] sm:$0xff]  ;;  %v632_v35 = vld [vmem:[%s5755_s2 + $0x118] sm:$0xff] }
 0x175   :  { %v372_v62 = vpop.xlane.xlu1 %371  ;;  %v4370_v49 = vpop.eup %3929  ;;  %3478 = vmatpush3.msra.mxu1 %v633_v29  ;;  %v600_v48 = vld [vmem:[%s5755_s2 + $0x18] sm:$0xff]  ;;  %v615_v55 = vld [vmem:[%s5755_s2 + $0x90] sm:$0xff]  ;;  %v613_v13 = vld [vmem:[%s5755_s2 + $0x80] sm:$0xff] }
 0x176   :  { %3955 = vpow2.f32 %v429_v28  ;;  %v403_v39 = vsub.f32 %v4200_v63, %v372_v62  ;;  %v404_v41 = vsub.f32 %v4204_v1, %v372_v62  ;;  %v4383_v61 = vpop.eup %3931  ;;  %v475_v63 = vadd.f32 %v4370_v49, %v4357_v56  ;;  %503 = vadd.xlane.f32.xlu0 %v502_v42  ;;  %v605_v1 = vld [vmem:[%s5755_s2 + $0x40] sm:$0xff]  ;;  %3479 = vmatprep.subr.mxu1 %v648_v52  ;;  %v616_v42 = vld [vmem:[%s5755_s2 + $0x98] sm:$0xff]  ;;  %v3247_v46 = vld [vmem:[%s5756_s3 + $0x8] sm:$0xff] }
 0x177   :  { %3957 = vpow2.f32 %v431_v36  ;;  %v4393_v4 = vpop.eup %3933  ;;  %3414 = vmatpush3.msra.mxu0 %v605_v1  ;;  %v601_v28 = vld [vmem:[%s5755_s2 + $0x20] sm:$0xff]  ;;  %3480 = vmatpush3.msra.mxu1 %v632_v35 }
 0x178   :  { %3959 = vpow2.f32 %v433_v37  ;;  %v465_v5 = vmul.f32 1.442695, %v403_v39  ;;  %v467_v45 = vmul.f32 1.442695, %v404_v41  ;;  %v4395_v38 = vpop.eup %3935  ;;  %476 = vadd.xlane.f32.xlu1 %v475_v63  ;;  %v505_v47 = vadd.f32 %v4393_v4, %v4383_v61  ;;  %3415 = vmatprep.subr.mxu0 %v620_v11  ;;  %v647_v37 = vld [vmem:[%s5755_s2 + $0x190] sm:$0xff]  ;;  %v646_v39 = vld [vmem:[%s5755_s2 + $0x188] sm:$0xff] }
 0x179   :  { %3961 = vpow2.f32 %v435_v58  ;;  %v4399_v40 = vpop.eup %3937  ;;  %3416 = vmatpush3.msra.mxu0 %v604_v51  ;;  %3481 = vmatprep.subr.mxu1 %v647_v37  ;;  %v598_v51 = vld [vmem:[%s5755_s2 + $0x8] sm:$0xff] }
 0x17a   :  { %3963 = vpow2.f32 %v465_v5  ;;  %v4404_v9 = vpop.eup %3939  ;;  %v478_v10 = vadd.f32 %v4399_v40, %v4395_v38  ;;  %506 = vadd.xlane.f32.xlu0 %v505_v47  ;;  %3417 = vmatprep.subr.mxu0 %v619_v44  ;;  %v599_v5 = vld [vmem:[%s5755_s2 + $0x10] sm:$0xff]  ;;  %v597_v44 = vld [vmem:[%s5755_s2] sm:$0xff] }
 0x17b   :  { %3965 = vpow2.f32 %v467_v45  ;;  %v4417_v53 = vpop.eup %3941  ;;  %3418 = vmatpush3.msra.mxu0 %v603_v15  ;;  %3482 = vmatpush3.msra.mxu1 %v631_v0  ;;  %v645_v45 = vld [vmem:[%s5755_s2 + $0x180] sm:$0xff] }
 0x17c   :  { %v4428_v22 = vpop.eup %3943  ;;  %479 = vadd.xlane.f32.xlu1 %v478_v10  ;;  %v508_v24 = vadd.f32 %v4417_v53, %v4404_v9  ;;  %3419 = vmatprep.subr.mxu0 %v618_v50  ;;  %v629_v10 = vld [vmem:[%s5755_s2 + $0x100] sm:$0xff] }
 0x17d   :  { %v4435_v27 = vpop.eup %3945  ;;  %3420 = vmatpush3.msra.mxu0 %v602_v19  ;;  %3483 = vmatprep.subr.mxu1 %v646_v39 }
 0x17e   :  { %v4440_v21 = vpop.eup %3947  ;;  %v481_v59 = vadd.f32 %v4435_v27, %v4428_v22  ;;  %509 = vadd.xlane.f32.xlu0 %v508_v24  ;;  %3421 = vmatprep.subr.mxu0 %v617_v25 }
 0x17f   :  { %v4453_v20 = vpop.eup %3949  ;;  %3422 = vmatpush3.msra.mxu0 %v601_v28  ;;  %3484 = vmatpush3.msra.mxu1 %v630_v60 }
 0x180   :  { %v4458_v30 = vpop.eup %3951  ;;  %482 = vadd.xlane.f32.xlu1 %v481_v59  ;;  %v511_v33 = vadd.f32 %v4453_v20, %v4440_v21  ;;  %3423 = vmatprep.subr.mxu0 %v616_v42 }
 0x181   :  { %v4468_v36 = vpop.eup %3953  ;;  %3424 = vmatpush3.msra.mxu0 %v600_v48  ;;  %3485 = vmatprep.subr.mxu1 %v645_v45 }
 0x182   :  { %v484_v62 = vadd.f32 %v4468_v36, %v4458_v30  ;;  %512 = vadd.xlane.f32.xlu0 %v511_v33  ;;  %3425 = vmatprep.subr.mxu0 %v615_v55 }
 0x183   :  { %v4473_v58 = vpop.eup %3955  ;;  %3426 = vmatpush3.msra.mxu0 %v599_v5  ;;  %3486 = vmatpush3.msra.mxu1 %v629_v10 }
 0x184   :  { %v4483_v43 = vpop.eup %3957  ;;  %485 = vadd.xlane.f32.xlu1 %v484_v62  ;;  %3427 = vmatprep.subr.mxu0 %v614_v7 }
 0x185   :  { %v4491_v41 = vpop.eup %3959  ;;  %v487_v32 = vadd.f32 %v4483_v43, %v4473_v58  ;;  %3428 = vmatpush3.msra.mxu0 %v598_v51  ;;  %3898 = vmatprep.subr.mxu1 %v3247_v46 }
 0x186   :  { %v4501_v63 = vpop.eup %3961  ;;  %3429 = vmatprep.subr.mxu0 %v613_v13 }
 0x187   :  { %v4503_v1 = vpop.eup %3963  ;;  %v490_v3 = vadd.f32 %v4501_v63, %v4491_v41  ;;  %3430 = vmatpush3.msra.mxu0 %v597_v44 }
 0x188   :  { %v4513_v47 = vpop.eup %3965  ;;  %488 = vadd.xlane.f32.xlu1 %v487_v32  ;;  %3664 = vmatprep.subr.mxu0 %v3247_v46 }
 0x189   :  { %491 = vadd.xlane.f32.xlu0 %v490_v3  ;;  %v514_v11 = vadd.f32 %v4513_v47, %v4503_v1 }
 0x18c   :  { %515 = vadd.xlane.f32.xlu1 %v514_v11 }
 0x1f3   :  { %v495_v15 = vpop.xlane.xlu0 %494 }
 0x1f4   :  { %3967 = vrcp.f32 %v495_v15 }
 0x1f7   :  { %v498_v24 = vpop.xlane.xlu0 %497 }
 0x1f8   :  { %3969 = vrcp.f32 %v498_v24 }
 0x1f9   :  { %v471_v17 = vpop.xlane.xlu1 %470 }
 0x1fa   :  { %3971 = vrcp.f32 %v471_v17 }
 0x1fb   :  { %v501_v29 = vpop.xlane.xlu0 %500 }
 0x1fc   :  { %3973 = vrcp.f32 %v501_v29 }
 0x1fd   :  { %v474_v59 = vpop.xlane.xlu1 %473 }
 0x1fe   :  { %3975 = vrcp.f32 %v474_v59 }
 0x1ff   :  { %v504_v50 = vpop.xlane.xlu0 %503 }
 0x200   :  { %3977 = vrcp.f32 %v504_v50 }
 0x201   :  { %v3968_v19 = vpop.eup %3967  ;;  %v477_v52 = vpop.xlane.xlu1 %476 }
 0x202   :  { %3979 = vrcp.f32 %v477_v52  ;;  %v550_v25 = vmul.f32 %v3968_v19, %v4313_v34  ;;  %v549_v33 = vmul.f32 %v3968_v19, %v4310_v54 }
 0x203   :  { %v507_v35 = vpop.xlane.xlu0 %506 }
 0x204   :  { %3981 = vrcp.f32 %v507_v35  ;;  %582 = vst [vmem:[%s5757_s4 + $0x88] sm:$0xff] %v550_v25  ;;  %830 = vmatprep.mubr.f32.mxu1 %v550_v25  ;;  %581 = vst [vmem:[%s5757_s4 + $0x80] sm:$0xff] %v549_v33  ;;  %v896_v25 = vlaneseq }
 0x205   :  { %v3970_v28 = vpop.eup %3969  ;;  %v480_v37 = vpop.xlane.xlu1 %479  ;;  %831 = vmatmul.mubr.f32.vlgmr.msra.gmra.mxu1 %v549_v33 }
 0x206   :  { %3983 = vrcp.f32 %v480_v37  ;;  %v552_v62 = vmul.f32 %v3970_v28, %v4323_v8  ;;  %v551_v34 = vmul.f32 %v3970_v28, %v4320_v6  ;;  %3899 = vmatpush3.msra.mxu1 %v3247_v46 }
 0x207   :  { %v3972_v54 = vpop.eup %3971  ;;  %v510_v42 = vpop.xlane.xlu0 %509 }
 0x208   :  { %3985 = vrcp.f32 %v510_v42  ;;  %v534_v0 = vmul.f32 %v3972_v54, %v4329_v14  ;;  %584 = vst [vmem:[%s5757_s4 + $0x98] sm:$0xff] %v552_v62  ;;  %835 = vmatprep.mubr.f32.mxu1 %v552_v62  ;;  %v533_v48 = vmul.f32 %v3972_v54, %v4325_v12  ;;  %583 = vst [vmem:[%s5757_s4 + $0x90] sm:$0xff] %v551_v34 }
 0x209   :  { %v3974_v8 = vpop.eup %3973  ;;  %v483_v39 = vpop.xlane.xlu1 %482  ;;  %836 = vmatmul.mubr.f32.gmra.mxu1 %v551_v34  ;;  %v4688_v34 = vshrl.u32 %v896_v25, 7 }
 0x20a   :  { %3987 = vrcp.f32 %v483_v39  ;;  %566 = vst [vmem:[%s5757_s4 + $0x8] sm:$0xff] %v534_v0  ;;  %725 = vmatprep.mubr.f32.mxu0 %v534_v0  ;;  %565 = vst [vmem:[%s5757_s4] sm:$0xff] %v533_v48  ;;  %v554_v6 = vmul.f32 %v3974_v8, %v4339_v18  ;;  %v553_v12 = vmul.f32 %v3974_v8, %v4334_v16 }
 0x20b   :  { %v3976_v14 = vpop.eup %3975  ;;  %726 = vmatmul.mubr.f32.vlgmr.msra.gmra.mxu0 %v533_v48  ;;  %v513_v32 = vpop.xlane.xlu0 %512 }
 0x20c   :  { %3989 = vrcp.f32 %v513_v32  ;;  %v536_v55 = vmul.f32 %v3976_v14, %v4345_v23  ;;  %586 = vst [vmem:[%s5757_s4 + $0xa8] sm:$0xff] %v554_v6  ;;  %840 = vmatprep.mubr.f32.mxu1 %v554_v6  ;;  %v535_v60 = vmul.f32 %v3976_v14, %v4341_v57  ;;  %585 = vst [vmem:[%s5757_s4 + $0xa0] sm:$0xff] %v553_v12  ;;  %3665 = vmatpush3.msra.mxu0 %v3247_v46  ;;  %v4700_v14 = vld [vmem:[%s5756_s3 + $0x18] sm:$0xff] }
 0x20d   :  { %v3978_v18 = vpop.eup %3977  ;;  %v486_v16 = vpop.xlane.xlu1 %485  ;;  %841 = vmatmul.mubr.f32.gmra.mxu1 %v553_v12  ;;  %v4695_v12 = vadd.s32 8, %v4688_v34 }
 0x20e   :  { %3991 = vrcp.f32 %v486_v16  ;;  %568 = vst [vmem:[%s5757_s4 + $0x18] sm:$0xff] %v536_v55  ;;  %730 = vmatprep.mubr.f32.mxu0 %v536_v55  ;;  %567 = vst [vmem:[%s5757_s4 + $0x10] sm:$0xff] %v535_v60  ;;  %v556_v57 = vmul.f32 %v3978_v18, %v4355_v26  ;;  %v555_v23 = vmul.f32 %v3978_v18, %v4350_v31 }
 0x20f   :  { %v3980_v3 = vpop.eup %3979  ;;  %731 = vmatmul.mubr.f32.gmra.mxu0 %v535_v60 }
 0x210   :  { %v538_v5 = vmul.f32 %v3980_v3, %v4370_v49  ;;  %588 = vst [vmem:[%s5757_s4 + $0xb8] sm:$0xff] %v556_v57  ;;  %845 = vmatprep.mubr.f32.mxu1 %v556_v57  ;;  %v537_v45 = vmul.f32 %v3980_v3, %v4357_v56  ;;  %587 = vst [vmem:[%s5757_s4 + $0xb0] sm:$0xff] %v555_v23  ;;  %v916_v3 = vand.u32 7, %v4695_v12 }
 0x211   :  { %v3982_v7 = vpop.eup %3981  ;;  %v489_v10 = vpop.xlane.xlu1 %488  ;;  %846 = vmatmul.mubr.f32.gmra.mxu1 %v555_v23 }
 0x212   :  { %v492_v26 = vpop.xlane.xlu0 %491  ;;  %3993 = vrcp.f32 %v489_v10  ;;  %570 = vst [vmem:[%s5757_s4 + $0x28] sm:$0xff] %v538_v5  ;;  %735 = vmatprep.mubr.f32.mxu0 %v538_v5  ;;  %569 = vst [vmem:[%s5757_s4 + $0x20] sm:$0xff] %v537_v45  ;;  %v558_v31 = vmul.f32 %v3982_v7, %v4393_v4  ;;  %v557_v56 = vmul.f32 %v3982_v7, %v4383_v61  ;;  %v4715_v7 = vadd.s32 16, %v4688_v34 }
 0x213   :  { %v3984_v49 = vpop.eup %3983  ;;  %3995 = vrcp.f32 %v492_v26  ;;  %736 = vmatmul.mubr.f32.gmra.mxu0 %v537_v45  ;;  %v909_v45 = vand.u32 7, %v4688_v34  ;;  %vm4729_vm3 = vcmp.gt.s32.totalorder %v916_v3, 0  ;;  %vm4793_vm6 = vcmp.lt.s32.totalorder %v916_v3, 7 }
 0x214   :  { %v540_v11 = vmul.f32 %v3984_v49, %v4399_v40  ;;  %590 = vst [vmem:[%s5757_s4 + $0xc8] sm:$0xff] %v558_v31  ;;  %850 = vmatprep.mubr.f32.mxu1 %v558_v31  ;;  %v539_v51 = vmul.f32 %v3984_v49, %v4395_v38  ;;  %589 = vst [vmem:[%s5757_s4 + $0xc0] sm:$0xff] %v557_v56 }
 0x215   :  { %v3986_v13 = vpop.eup %3985  ;;  %v516_v4 = vpop.xlane.xlu1 %515  ;;  %851 = vmatmul.mubr.f32.gmra.mxu1 %v557_v56  ;;  %v4722_v56 = vld [vmem:[%s5756_s3 + $0x20] sm:$0xff]  ;;  %vm4743_vm4 = vcmp.lt.s32.totalorder %v909_v45, 7  ;;  %vm4867_vm11 = vcmp.gt.s32.totalorder %v909_v45, 0 }
 0x216   :  { %3997 = vrcp.f32 %v516_v4  ;;  %572 = vst [vmem:[%s5757_s4 + $0x38] sm:$0xff] %v540_v11  ;;  %740 = vmatprep.mubr.f32.mxu0 %v540_v11  ;;  %571 = vst [vmem:[%s5757_s4 + $0x30] sm:$0xff] %v539_v51  ;;  %v560_v61 = vmul.f32 %v3986_v13, %v4417_v53  ;;  %v559_v38 = vmul.f32 %v3986_v13, %v4404_v9 }
 0x217   :  { %v3988_v40 = vpop.eup %3987  ;;  %741 = vmatmul.mubr.f32.gmra.mxu0 %v539_v51 }
 0x218   :  { %v542_v44 = vmul.f32 %v3988_v40, %v4435_v27  ;;  %592 = vst [vmem:[%s5757_s4 + $0xd8] sm:$0xff] %v560_v61  ;;  %855 = vmatprep.mubr.f32.mxu1 %v560_v61  ;;  %v541_v46 = vmul.f32 %v3988_v40, %v4428_v22  ;;  %591 = vst [vmem:[%s5757_s4 + $0xd0] sm:$0xff] %v559_v38 }
 0x219   :  { %v3990_v15 = vpop.eup %3989  ;;  %856 = vmatmul.mubr.f32.gmra.mxu1 %v559_v38 }
 0x21a   :  { %574 = vst [vmem:[%s5757_s4 + $0x48] sm:$0xff] %v542_v44  ;;  %745 = vmatprep.mubr.f32.mxu0 %v542_v44  ;;  %573 = vst [vmem:[%s5757_s4 + $0x40] sm:$0xff] %v541_v46  ;;  %v562_v9 = vmul.f32 %v3990_v15, %v4453_v20  ;;  %v561_v53 = vmul.f32 %v3990_v15, %v4440_v21  ;;  %v923_v44 = vand.u32 7, %v4715_v7  ;;  %v4749_v15 = vadd.s32 24, %v4688_v34 }
 0x21b   :  { %v3992_v22 = vpop.eup %3991  ;;  %746 = vmatmul.mubr.f32.gmra.mxu0 %v541_v46  ;;  %v5773_v46 = vmov 0 }
 0x21c   :  { %v544_v27 = vmul.f32 %v3992_v22, %v4468_v36  ;;  %594 = vst [vmem:[%s5757_s4 + $0xe8] sm:$0xff] %v562_v9  ;;  %860 = vmatprep.mubr.f32.mxu1 %v562_v9  ;;  %v543_v24 = vmul.f32 %v3992_v22, %v4458_v30  ;;  %593 = vst [vmem:[%s5757_s4 + $0xe0] sm:$0xff] %v561_v53  ;;  %v5774_v46 = vsel %vm4743_vm4, 4294967295, %v5773_v46  ;;  %vm4769_vm5 = vcmp.gt.s32.totalorder %v923_v44, 0 }
 0x21d   :  { %861 = vmatmul.mubr.f32.gmra.mxu1 %v561_v53  ;;  %vm4833_vm8 = vcmp.lt.s32.totalorder %v923_v44, 7 }
 0x21e   :  { %576 = vst [vmem:[%s5757_s4 + $0x58] sm:$0xff] %v544_v27  ;;  %750 = vmatprep.mubr.f32.mxu0 %v544_v27  ;;  %575 = vst [vmem:[%s5757_s4 + $0x50] sm:$0xff] %v543_v24  ;;  %v4989_v27 = vld [vmem:[%s5756_s3 + $0x30] sm:$0xff] }
 0x21f   :  { %v3994_v21 = vpop.eup %3993  ;;  %751 = vmatmul.mubr.f32.gmra.mxu0 %v543_v24 }
 0x220   :  { %v3996_v20 = vpop.eup %3995  ;;  %v546_v36 = vmul.f32 %v3994_v21, %v4483_v43  ;;  %v545_v30 = vmul.f32 %v3994_v21, %v4473_v58 }
 0x221   :  { %v548_v17 = vmul.f32 %v3996_v20, %v4501_v63  ;;  %v547_v29 = vmul.f32 %v3996_v20, %v4491_v41  ;;  %v1074_v41 = vld [vmem:[#allocation2 + $0x68] sm:$0xff] }
 0x222   :  { %578 = vst [vmem:[%s5757_s4 + $0x68] sm:$0xff] %v546_v36  ;;  %755 = vmatprep.mubr.f32.mxu0 %v546_v36  ;;  %577 = vst [vmem:[%s5757_s4 + $0x60] sm:$0xff] %v545_v30  ;;  %v1066_v63 = vld [vmem:[#allocation2 + $0x8] sm:$0xff] }
 0x223   :  { %v3998_v59 = vpop.eup %3997  ;;  %756 = vmatmul.mubr.f32.gmra.mxu0 %v545_v30  ;;  %580 = vst [vmem:[%s5757_s4 + $0x78] sm:$0xff] %v548_v17  ;;  %579 = vst [vmem:[%s5757_s4 + $0x70] sm:$0xff] %v547_v29 }
 0x224   :  { %760 = vmatprep.mubr.f32.mxu0 %v548_v17  ;;  %v564_v58 = vmul.f32 %v3998_v59, %v4513_v47  ;;  %v563_v43 = vmul.f32 %v3998_v59, %v4503_v1  ;;  %v1065_v1 = vld [vmem:[%s5756_s3] sm:$0xff]  ;;  %v3280_v47 = vld [vmem:[%s5756_s3 + $0x10] sm:$0xff] }
 0x225   :  { %3690 = vmatprep.subr.mxu1 %v1065_v1  ;;  %3716 = vmatprep.subr.mxu0 %v3280_v47 }
 0x226   :  { %596 = vst [vmem:[%s5757_s4 + $0xf8] sm:$0xff] %v564_v58  ;;  %865 = vmatprep.mubr.f32.mxu1 %v564_v58  ;;  %595 = vst [vmem:[%s5757_s4 + $0xf0] sm:$0xff] %v563_v43  ;;  %v930_v58 = vand.u32 7, %v4749_v15 }
 0x227   :  { %761 = vmatmul.mubr.f32.gmra.mxu0 %v547_v29  ;;  %866 = vmatmul.mubr.f32.gmra.mxu1 %v563_v43  ;;  %v4775_v43 = vadd.s32 32, %v4688_v34 }
 0x228   :  { %3678 = vmatprep.mubr.msk.f32.mxu1 %vm871_vm2, %v1074_v41  ;;  %3666 = vmatprep.mubr.msk.f32.mxu0 %vm871_vm2, %v1066_v63  ;;  %vm4808_vm7 = vcmp.gt.s32.totalorder %v930_v58, 0  ;;  %vm4859_vm10 = vcmp.lt.s32.totalorder %v930_v58, 7 }
 0x2c5   :  { %v3487_v50 = vpop.f32.mrf.mxu1 }
 0x2c7   :  { %v3488_v19 = vpop.f32.mrf.mxu1 }
 0x2c8   :  { %v3489_v52 = vadd.f32 %v3488_v19, %v3487_v50 }
 0x2c9   :  { %v3490_v2 = vpop.f32.mrf.mxu1 }
 0x2ca   :  { %888 = vst.msk [vmem:[#allocation2 + $0x70] sm:$0xff] %vm871_vm2, %v3489_v52 }
 0x2cb   :  { %v3431_v33 = vpop.f32.mrf.mxu0  ;;  %v3491_v35 = vpop.f32.mrf.mxu1 }
 0x2cc   :  { %v3492_v28 = vadd.f32 %v3491_v35, %v3490_v2 }
 0x2cd   :  { %v3432_v37 = vpop.f32.mrf.mxu0  ;;  %v3493_v62 = vpop.f32.mrf.mxu1 }
 0x2ce   :  { %v3433_v54 = vadd.f32 %v3432_v37, %v3431_v33  ;;  %889 = vst.msk [vmem:[#allocation2 + $0x78] sm:$0xff] %vm871_vm2, %v3492_v28 }
 0x2cf   :  { %v3434_v42 = vpop.f32.mrf.mxu0  ;;  %v3494_v0 = vpop.f32.mrf.mxu1 }
 0x2d0   :  { %880 = vst.msk [vmem:[#allocation2 + $0x10] sm:$0xff] %vm871_vm2, %v3433_v54  ;;  %v3495_v48 = vadd.f32 %v3494_v0, %v3493_v62  ;;  %v937_v0 = vand.u32 7, %v4775_v43 }
 0x2d1   :  { %v3435_v8 = vpop.f32.mrf.mxu0  ;;  %v3496_v39 = vpop.f32.mrf.mxu1  ;;  %v4692_v6 = vld [vmem:[#allocation2 + $0x70] sm:$0xff] }
 0x2d2   :  { %v3436_v32 = vadd.f32 %v3435_v8, %v3434_v42  ;;  %890 = vst.msk [vmem:[#allocation2 + $0x80] sm:$0xff] %vm871_vm2, %v3495_v48  ;;  %3679 = vmatmul.mubr.msk.f32.vlgmr.msra.gmra.mxu1 %vm871_vm2, %v4692_v6  ;;  %v4814_v48 = vadd.s32 40, %v4688_v34  ;;  %vm4854_vm9 = vcmp.gt.s32.totalorder %v937_v0, 0  ;;  %vm4925_vm13 = vcmp.lt.s32.totalorder %v937_v0, 7 }
 0x2d3   :  { %v3437_v55 = vpop.f32.mrf.mxu0  ;;  %v3497_v60 = vpop.f32.mrf.mxu1  ;;  %3691 = vmatpush3.msra.mxu1 %v1065_v1  ;;  %v904_v0 = vadd.s32 56, %v4688_v34 }
 0x2d4   :  { %881 = vst.msk [vmem:[#allocation2 + $0x18] sm:$0xff] %vm871_vm2, %v3436_v32  ;;  %v3498_v18 = vadd.f32 %v3497_v60, %v3496_v39  ;;  %3742 = vmatprep.subr.mxu1 %v4700_v14  ;;  %v944_v44 = vand.u32 7, %v4814_v48 }
 0x2d5   :  { %v3438_v16 = vpop.f32.mrf.mxu0  ;;  %v3499_v57 = vpop.f32.mrf.mxu1  ;;  %v4707_v23 = vld [vmem:[#allocation2 + $0x78] sm:$0xff] }
 0x2d6   :  { %v3439_v5 = vadd.f32 %v3438_v16, %v3437_v55  ;;  %891 = vst.msk [vmem:[#allocation2 + $0x88] sm:$0xff] %vm871_vm2, %v3498_v18  ;;  %3681 = vmatprep.mubr.msk.f32.mxu1 %vm871_vm2, %v4707_v23  ;;  %v1017_v16 = vld [vmem:[#allocation2 + $0x7] sm:$0xff]  ;;  %vm4904_vm12 = vcmp.gt.s32.totalorder %v944_v44, 0  ;;  %vm5008_vm15 = vcmp.lt.s32.totalorder %v944_v44, 7 }
 0x2d7   :  { %v3440_v10 = vpop.f32.mrf.mxu0  ;;  %v4717_v26 = vld [vmem:[#allocation2 + $0x10] sm:$0xff]  ;;  %v3500_v31 = vpop.f32.mrf.mxu1  ;;  %v1049_v45 = vsel %vm4867_vm11, %v1017_v16, 0.0 }
 0x2d8   :  { %882 = vst.msk [vmem:[#allocation2 + $0x20] sm:$0xff] %vm871_vm2, %v3439_v5  ;;  %3667 = vmatmul.mubr.msk.f32.vlgmr.msra.gmra.mxu0 %vm871_vm2, %v4717_v26  ;;  %v3501_v49 = vadd.f32 %v3500_v31, %v3499_v57  ;;  %v5781_v57 = vmov 0  ;;  %v4898_v16 = vld [vmem:[#allocation2 + $0xf] sm:$0xff]  ;;  %v5799_v31 = vmov 0 }
 0x2d9   :  { %v3441_v11 = vpop.f32.mrf.mxu0  ;;  %v3502_v51 = vpop.f32.mrf.mxu1  ;;  %v4727_v13 = vld [vmem:[#allocation2 + $0x80] sm:$0xff]  ;;  %3717 = vmatpush3.msra.mxu0 %v3280_v47  ;;  %v5782_v57 = vsel %vm4833_vm8, 4294967295, %v5781_v57 }
 0x2da   :  { %v4733_v61 = vld [vmem:[#allocation2 + $0x7f] sm:$0xff]  ;;  %v3442_v40 = vadd.f32 %v3441_v11, %v3440_v10  ;;  %892 = vst.msk [vmem:[#allocation2 + $0x90] sm:$0xff] %vm871_vm2, %v3501_v49  ;;  %3682 = vmatmul.mubr.msk.f32.gmra.mxu1 %vm871_vm2, %v4727_v13  ;;  %3768 = vmatprep.subr.mxu0 %v4722_v56  ;;  %v1470_v49 = vld [vmem:[#allocation2 + $0x9] sm:$0xff] }
 0x2db   :  { %v4735_v38 = vld [vmem:[#allocation2 + $0x79] sm:$0xff]  ;;  %v3443_v9 = vpop.f32.mrf.mxu0  ;;  %v3503_v22 = vpop.f32.mrf.mxu1  ;;  %v4962_v62 = vld [vmem:[#allocation2 + $0x11] sm:$0xff] }
 0x2dc   :  { %v4751_v53 = vld [vmem:[#allocation2 + $0x18] sm:$0xff]  ;;  %883 = vst.msk [vmem:[#allocation2 + $0x28] sm:$0xff] %vm871_vm2, %v3442_v40  ;;  %v3504_v21 = vadd.f32 %v3503_v22, %v3502_v51 }
 0x2dd   :  { %3669 = vmatprep.mubr.msk.f32.mxu0 %vm871_vm2, %v4751_v53  ;;  %v3444_v20 = vpop.f32.mrf.mxu0  ;;  %v3505_v36 = vpop.f32.mrf.mxu1  ;;  %v4762_v30 = vld [vmem:[#allocation2 + $0x88] sm:$0xff]  ;;  %v4900_v43 = vld [vmem:[#allocation2 + $0x17] sm:$0xff] }
 0x2de   :  { %v4764_v17 = vld [vmem:[#allocation2 + $0x87] sm:$0xff]  ;;  %v3445_v29 = vadd.f32 %v3444_v20, %v3443_v9  ;;  %893 = vst.msk [vmem:[#allocation2 + $0x98] sm:$0xff] %vm871_vm2, %v3504_v21  ;;  %3684 = vmatprep.mubr.msk.f32.mxu1 %vm871_vm2, %v4762_v30  ;;  %v5787_v20 = vmov 0 }
 0x2df   :  { %v3446_v41 = vpop.f32.mrf.mxu0  ;;  %v4777_v63 = vld [vmem:[#allocation2 + $0x20] sm:$0xff]  ;;  %v3506_v1 = vpop.f32.mrf.mxu1  ;;  %v5788_v20 = vsel %vm4867_vm11, 4294967295, %v5787_v20 }
 0x2e0   :  { %v4779_v47 = vld [vmem:[#allocation2 + $0x1f] sm:$0xff]  ;;  %884 = vst.msk [vmem:[#allocation2 + $0x30] sm:$0xff] %vm871_vm2, %v3445_v29  ;;  %3670 = vmatmul.mubr.msk.f32.gmra.mxu0 %vm871_vm2, %v4777_v63  ;;  %v3507_v52 = vadd.f32 %v3506_v1, %v3505_v36 }
 0x2e1   :  { %v4781_v50 = vld [vmem:[#allocation2 + $0x19] sm:$0xff]  ;;  %v4789_v2 = vld [vmem:[#allocation2 + $0x81] sm:$0xff]  ;;  %v3447_v25 = vpop.f32.mrf.mxu0  ;;  %v4791_v33 = vld [vmem:[#allocation2 + $0x90] sm:$0xff] }
 0x2e2   :  { %v4797_v28 = vld [vmem:[#allocation2 + $0x8f] sm:$0xff]  ;;  %v3448_v54 = vadd.f32 %v3447_v25, %v3446_v41  ;;  %894 = vst.msk [vmem:[#allocation2 + $0xa0] sm:$0xff] %vm871_vm2, %v3507_v52  ;;  %3685 = vmatmul.mubr.msk.f32.gmra.mxu1 %vm871_vm2, %v4791_v33 }
 0x2e3   :  { %v4816_v8 = vld [vmem:[#allocation2 + $0x89] sm:$0xff]  ;;  %v3449_v39 = vpop.f32.mrf.mxu0  ;;  %v4822_v55 = vld [vmem:[#allocation2 + $0x21] sm:$0xff] }
 0x2e4   :  { %v4818_v12 = vld [vmem:[#allocation2 + $0x28] sm:$0xff]  ;;  %885 = vst.msk [vmem:[#allocation2 + $0x38] sm:$0xff] %vm871_vm2, %v3448_v54  ;;  %v1505_v48 = vsel %vm4859_vm10, %v4822_v55, 0.0 }
 0x2e5   :  { %v4820_v32 = vld [vmem:[#allocation2 + $0x27] sm:$0xff]  ;;  %3672 = vmatprep.mubr.msk.f32.mxu0 %vm871_vm2, %v4818_v12  ;;  %v3450_v3 = vpop.f32.mrf.mxu0  ;;  %v4837_v5 = vld [vmem:[#allocation2 + $0x98] sm:$0xff] }
 0x2e6   :  { %v4839_v7 = vld [vmem:[#allocation2 + $0x97] sm:$0xff]  ;;  %v3451_v51 = vadd.f32 %v3450_v3, %v3449_v39  ;;  %3687 = vmatprep.mubr.msk.f32.mxu1 %vm871_vm2, %v4837_v5 }
 0x2e7   :  { %v4841_v10 = vld [vmem:[#allocation2 + $0x91] sm:$0xff]  ;;  %v3452_v9 = vpop.f32.mrf.mxu0  ;;  %v3508_v22 = vpop.f32.mrf.mxu1  ;;  %v4873_v29 = vld [vmem:[#allocation2 + $0x29] sm:$0xff] }
 0x2e8   :  { %v4863_v21 = vld [vmem:[#allocation2 + $0x30] sm:$0xff]  ;;  %886 = vst.msk [vmem:[#allocation2 + $0x40] sm:$0xff] %vm871_vm2, %v3451_v51 }
 0x2e9   :  { %v4871_v36 = vld [vmem:[#allocation2 + $0x2f] sm:$0xff]  ;;  %3673 = vmatmul.mubr.msk.f32.gmra.mxu0 %vm871_vm2, %v4863_v21  ;;  %v3453_v41 = vpop.f32.mrf.mxu0  ;;  %v3509_v1 = vpop.f32.mrf.mxu1  ;;  %v4886_v52 = vld [vmem:[#allocation2 + $0xa0] sm:$0xff] }
 0x2ea   :  { %v4888_v25 = vld [vmem:[#allocation2 + $0x9f] sm:$0xff]  ;;  %v3454_v3 = vadd.f32 %v3453_v41, %v3452_v9  ;;  %v3510_v51 = vadd.f32 %v3509_v1, %v3508_v22  ;;  %3688 = vmatmul.mubr.msk.f32.gmra.mxu1 %vm871_vm2, %v4886_v52  ;;  %v903_v1 = vadd.s32 48, %v4688_v34  ;;  %v1051_v41 = vsel %vm4769_vm5, %v4900_v43, 0.0 }
 0x2eb   :  { %v4908_v18 = vld [vmem:[#allocation2 + $0x99] sm:$0xff]  ;;  %3692 = vmatprep.mubr.msk.f32.mxu1 %vm871_vm2, %v1049_v45  ;;  %v4915_v22 = vld [vmem:[#allocation2 + $0x31] sm:$0xff]  ;;  %v1050_v45 = vsel %vm4729_vm3, %v4898_v16, 0.0  ;;  %v1053_v34 = vsel %vm4854_vm9, %v4820_v32, 0.0 }
 0x2ec   :  { %v4910_v24 = vld [vmem:[#allocation2 + $0x38] sm:$0xff]  ;;  %5791 = vst [vmem:[#allocation3_spill] sm:$0xff] %v4915_v22  ;;  %887 = vst.msk [vmem:[#allocation2 + $0x48] sm:$0xff] %vm871_vm2, %v3454_v3  ;;  %v4935_v3 = vld [vmem:[%s5756_s3 + $0x28] sm:$0xff]  ;;  %v1507_v44 = vsel %vm5008_vm15, %v4915_v22, 0.0 }
 0x2ed   :  { %v4913_v9 = vld [vmem:[#allocation2 + $0x37] sm:$0xff]  ;;  %895 = vst.msk [vmem:[#allocation2 + $0xa8] sm:$0xff] %vm871_vm2, %v3510_v51  ;;  %3675 = vmatprep.mubr.msk.f32.mxu0 %vm871_vm2, %v4910_v24  ;;  %v1478_v22 = vld [vmem:[#allocation2 + $0x69] sm:$0xff] }
 0x2ee   :  { %3693 = vmatmul.mubr.msk.f32.vlgmr.msra.gmra.mxu1 %vm871_vm2, %v1050_v45  ;;  %v1502_v45 = vsel %vm4743_vm4, %v1470_v49, 0.0  ;;  %v958_v49 = vand.u32 7, %v904_v0  ;;  %v1025_v0 = vld [vmem:[#allocation2 + $0x67] sm:$0xff] }
 0x2ef   :  { %v4950_v58 = vld [vmem:[#allocation2 + $0x40] sm:$0xff]  ;;  %3695 = vmatprep.mubr.msk.f32.mxu1 %vm871_vm2, %v1051_v41  ;;  %3743 = vmatpush3.msra.mxu1 %v4700_v14  ;;  %v1052_v14 = vsel %vm4808_vm7, %v4779_v47, 0.0  ;;  %v951_v41 = vand.u32 7, %v903_v1 }
 0x2f0   :  { %v4954_v60 = vld [vmem:[#allocation2 + $0x3f] sm:$0xff]  ;;  %3676 = vmatmul.mubr.msk.f32.gmra.mxu0 %vm871_vm2, %v4950_v58  ;;  %3794 = vmatprep.subr.mxu1 %v4935_v3  ;;  %vm5031_vm0 = vcmp.gt.s32.totalorder %v958_v49, 0 }
 0x2f1   :  { %v4956_v19 = vld [vmem:[#allocation2 + $0x39] sm:$0xff]  ;;  %3718 = vmatprep.mubr.msk.f32.mxu0 %vm871_vm2, %v1502_v45  ;;  %v1503_v45 = vsel %vm4793_vm6, %v4962_v62, 0.0  ;;  %vm5002_vm14 = vcmp.gt.s32.totalorder %v951_v41, 0  ;;  %v5800_v31 = vsel %vm5031_vm0, 4294967295, %v5799_v31  ;;  %vm5047_vm1 = vcmp.lt.s32.totalorder %v951_v41, 7 }
 0x2f2   :  { %3696 = vmatmul.mubr.msk.f32.gmra.mxu1 %vm871_vm2, %v1052_v14  ;;  %v1504_v14 = vsel %vm4833_vm8, %v4781_v50, 0.0 }
 0x2f3   :  { %3698 = vmatprep.mubr.msk.f32.mxu1 %vm871_vm2, %v1053_v34  ;;  %v4984_v1 = vld [vmem:[#allocation2 + $0x41] sm:$0xff]  ;;  %v1054_v34 = vsel %vm4904_vm12, %v4871_v36, 0.0 }
 0x2f4   :  { %5794 = vst [vmem:[#allocation4_spill] sm:$0xff] %v4984_v1  ;;  %3719 = vmatmul.mubr.msk.f32.vlgmr.msra.gmra.mxu0 %vm871_vm2, %v1503_v45  ;;  %v4995_v51 = vld [vmem:[#allocation2 + $0xa1] sm:$0xff] }
 0x2f5   :  { %3769 = vmatpush3.msra.mxu0 %v4722_v56  ;;  %3721 = vmatprep.mubr.msk.f32.mxu0 %vm871_vm2, %v1504_v14  ;;  %v1055_v56 = vsel %vm5002_vm14, %v4913_v9, 0.0  ;;  %v1057_v14 = vsel %vm4867_vm11, %v1025_v0, 0.0  ;;  %v5052_v0 = vld [vmem:[#allocation2 + $0x77] sm:$0xff]  ;;  %vm5058_vm11 = vcmp.lt.s32.totalorder %v958_v49, 7  ;;  %v2229_v4 = vsel %vm5047_vm1, %v4995_v51, 0.0 }
 0x2f6   :  { %3699 = vmatmul.mubr.msk.f32.gmra.mxu1 %vm871_vm2, %v1054_v34  ;;  %3820 = vmatprep.subr.mxu0 %v4989_v27  ;;  %v1506_v34 = vsel %vm4925_vm13, %v4873_v29, 0.0  ;;  %v1509_v49 = vsel %vm5058_vm11, %v4984_v1, 0.0  ;;  %v1061_v1 = vsel %vm4854_vm9, %v4764_v17, 0.0  ;;  %v5832_v35 = vsel %vm5008_vm15, %v4995_v51, 0.0 }
 0x2f7   :  { %3701 = vmatprep.mubr.msk.f32.mxu1 %vm871_vm2, %v1055_v56  ;;  %v1056_v56 = vsel %vm5031_vm0, %v4954_v60, 0.0 }
 0x2f8   :  { %3722 = vmatmul.mubr.msk.f32.gmra.mxu0 %vm871_vm2, %v1505_v48  ;;  %v5042_v48 = vld [vmem:[#allocation2 + $0x6f] sm:$0xff] }
 0x2f9   :  { %3724 = vmatprep.mubr.msk.f32.mxu0 %vm871_vm2, %v1506_v34  ;;  %v1508_v34 = vsel %vm5047_vm1, %v4956_v19, 0.0  ;;  %v1058_v41 = vsel %vm4729_vm3, %v5042_v48, 0.0 }
 0x2fa   :  { %3702 = vmatmul.mubr.msk.f32.gmra.mxu1 %vm871_vm2, %v1056_v56 }
 0x2fb   :  { %3704 = vmatprep.mubr.msk.f32.mxu1 %vm871_vm2, %v1057_v14  ;;  %v1059_v14 = vsel %vm4769_vm5, %v5052_v0, 0.0 }
 0x2fc   :  { %3725 = vmatmul.mubr.msk.f32.gmra.mxu0 %vm871_vm2, %v1507_v44  ;;  %v1510_v44 = vsel %vm4743_vm4, %v1478_v22, 0.0  ;;  %v1512_v22 = vsel %vm4833_vm8, %v4735_v38, 0.0  ;;  %vm5805_vm8 = vnez %v5788_v20  ;;  %v5816_v20 = vsel %vm4769_vm5, %v4764_v17, 0.0 }
 0x2fd   :  { %3727 = vmatprep.mubr.msk.f32.mxu0 %vm871_vm2, %v1508_v34  ;;  %v5077_v34 = vld [vmem:[#allocation2 + $0x71] sm:$0xff] }
 0x2fe   :  { %3705 = vmatmul.mubr.msk.f32.gmra.mxu1 %vm871_vm2, %v1058_v41  ;;  %v1060_v41 = vsel %vm4808_vm7, %v4733_v61, 0.0 }
 0x2ff   :  { %3707 = vmatprep.mubr.msk.f32.mxu1 %vm871_vm2, %v1059_v14  ;;  %v1511_v14 = vsel %vm4793_vm6, %v5077_v34, 0.0 }
 0x300   :  { %3728 = vmatmul.mubr.msk.f32.gmra.mxu0 %vm871_vm2, %v1509_v49  ;;  %v1062_v49 = vsel %vm4904_vm12, %v4797_v28, 0.0 }
 0x301   :  { %3730 = vmatprep.mubr.msk.f32.mxu0 %vm871_vm2, %v1510_v44  ;;  %v1063_v44 = vsel %vm5002_vm14, %v4839_v7, 0.0 }
 0x302   :  { %3708 = vmatmul.mubr.msk.f32.gmra.mxu1 %vm871_vm2, %v1060_v41  ;;  %v1514_v41 = vsel %vm4925_vm13, %v4816_v8, 0.0 }
 0x303   :  { %3710 = vmatprep.mubr.msk.f32.mxu1 %vm871_vm2, %v1061_v1  ;;  %v1513_v1 = vsel %vm4859_vm10, %v4789_v2, 0.0 }
 0x304   :  { %3731 = vmatmul.mubr.msk.f32.gmra.mxu0 %vm871_vm2, %v1511_v14  ;;  %v1064_v14 = vsel %vm5031_vm0, %v4888_v25, 0.0 }
 0x305   :  { %3733 = vmatprep.mubr.msk.f32.mxu0 %vm871_vm2, %v1512_v22  ;;  %v1745_v22 = vsel %vm5805_vm8, %v4898_v16, 0.0  ;;  %v3365_v16 = vld [vmem:[%s5756_s3 + $0x38] sm:$0xff] }
 0x306   :  { %3711 = vmatmul.mubr.msk.f32.gmra.mxu1 %vm871_vm2, %v1062_v49  ;;  %v1515_v49 = vsel %vm5008_vm15, %v4841_v10, 0.0 }
 0x307   :  { %3713 = vmatprep.mubr.msk.f32.mxu1 %vm871_vm2, %v1063_v44  ;;  %v1516_v44 = vsel %vm5047_vm1, %v4908_v18, 0.0 }
 0x308   :  { %3734 = vmatmul.mubr.msk.f32.gmra.mxu0 %vm871_vm2, %v1513_v1  ;;  %v1746_v1 = vsel %vm4729_vm3, %v4900_v43, 0.0 }
 0x309   :  { %3736 = vmatprep.mubr.msk.f32.mxu0 %vm871_vm2, %v1514_v41  ;;  %v1747_v41 = vsel %vm4769_vm5, %v4779_v47, 0.0 }
 0x30a   :  { %3714 = vmatmul.mubr.msk.f32.gmra.mxu1 %vm871_vm2, %v1064_v14  ;;  %v1517_v14 = vsel %vm5058_vm11, %v4995_v51, 0.0 }
 0x30b   :  { %3744 = vmatprep.mubr.msk.f32.mxu1 %vm871_vm2, %v1745_v22  ;;  %v1748_v22 = vsel %vm4808_vm7, %v4820_v32, 0.0 }
 0x30c   :  { %3737 = vmatmul.mubr.msk.f32.gmra.mxu0 %vm871_vm2, %v1515_v49  ;;  %v1749_v49 = vsel %vm4854_vm9, %v4871_v36, 0.0 }
 0x30d   :  { %3739 = vmatprep.mubr.msk.f32.mxu0 %vm871_vm2, %v1516_v44  ;;  %v1751_v44 = vsel %vm5002_vm14, %v4954_v60, 0.0 }
 0x30e   :  { %3745 = vmatmul.mubr.msk.f32.vlgmr.msra.gmra.mxu1 %vm871_vm2, %v1746_v1  ;;  %v5169_v1 = vld [vmem:[#allocation2 + $0x47] sm:$0xff] }
 0x30f   :  { %3747 = vmatprep.mubr.msk.f32.mxu1 %vm871_vm2, %v1747_v41  ;;  %3795 = vmatpush3.msra.mxu1 %v4935_v3  ;;  %v3382_v3 = vld [vmem:[%s5756_s3 + $0x40] sm:$0xff]  ;;  %v1753_v41 = vsel %vm5805_vm8, %v5042_v48, 0.0  ;;  %v1756_v48 = vsel %vm4808_vm7, %v4764_v17, 0.0  ;;  %v5818_v17 = vsel %vm4854_vm9, %v4839_v7, 0.0 }
 0x310   :  { %3740 = vmatmul.mubr.msk.f32.gmra.mxu0 %vm871_vm2, %v1517_v14  ;;  %3846 = vmatprep.subr.mxu1 %v3365_v16  ;;  %v1754_v14 = vsel %vm4729_vm3, %v5052_v0, 0.0 }
 0x311   :  { %3770 = vmatprep.mubr.msk.f32.mxu0 %vm871_vm2, %v4717_v26  ;;  %v1750_v26 = vsel %vm4904_vm12, %v4913_v9, 0.0 }
 0x312   :  { %3748 = vmatmul.mubr.msk.f32.gmra.mxu1 %vm871_vm2, %v1748_v22  ;;  %v1755_v22 = vsel %vm4769_vm5, %v4733_v61, 0.0 }
 0x313   :  { %3750 = vmatprep.mubr.msk.f32.mxu1 %vm871_vm2, %v1749_v49  ;;  %v5195_v49 = vld [vmem:[#allocation2 + $0x48] sm:$0xff] }
 0x314   :  { %3771 = vmatmul.mubr.msk.f32.vlgmr.msra.gmra.mxu0 %vm871_vm2, %v4751_v53 }
 0x315   :  { %3821 = vmatpush3.msra.mxu0 %v4989_v27  ;;  %3773 = vmatprep.mubr.msk.f32.mxu0 %vm871_vm2, %v4777_v63  ;;  %v1752_v27 = vsel %vm5031_vm0, %v5169_v1, 0.0 }
 0x316   :  { %3751 = vmatmul.mubr.msk.f32.gmra.mxu1 %vm871_vm2, %v1750_v26  ;;  %3872 = vmatprep.subr.mxu0 %v3382_v3  ;;  %v1757_v26 = vsel %vm4854_vm9, %v4797_v28, 0.0 }
 0x317   :  { %3753 = vmatprep.mubr.msk.f32.mxu1 %vm871_vm2, %v1751_v44  ;;  %v1759_v44 = vsel %vm5002_vm14, %v4888_v25, 0.0 }
 0x318   :  { %3774 = vmatmul.mubr.msk.f32.gmra.mxu0 %vm871_vm2, %v4818_v12 }
 0x319   :  { %3776 = vmatprep.mubr.msk.f32.mxu0 %vm871_vm2, %v4863_v21 }
 0x31a   :  { %3754 = vmatmul.mubr.msk.f32.gmra.mxu1 %vm871_vm2, %v1752_v27  ;;  %v5221_v27 = vld [vmem:[#allocation2 + $0xa7] sm:$0xff] }
 0x31b   :  { %3756 = vmatprep.mubr.msk.f32.mxu1 %vm871_vm2, %v1753_v41  ;;  %v1760_v41 = vsel %vm5031_vm0, %v5221_v27, 0.0  ;;  %vm5806_vm0 = vnez %v5782_v57  ;;  %v2472_v42 = vsel %vm5002_vm14, %v5221_v27, 0.0 }
 0x31c   :  { %3777 = vmatmul.mubr.msk.f32.gmra.mxu0 %vm871_vm2, %v4910_v24 }
 0x31d   :  { %3779 = vmatprep.mubr.msk.f32.mxu0 %vm871_vm2, %v4950_v58 }
 0x31e   :  { %3757 = vmatmul.mubr.msk.f32.gmra.mxu1 %vm871_vm2, %v1754_v14  ;;  %v2215_v14 = vsel %vm4743_vm4, %v4962_v62, 0.0  ;;  %v2458_v62 = vsel %vm5805_vm8, %v4900_v43, 0.0  ;;  %v5809_v43 = vsel %vm4769_vm5, %v4820_v32, 0.0  ;;  %v5812_v32 = vsel %vm4854_vm9, %v4913_v9, 0.0 }
 0x31f   :  { %3759 = vmatprep.mubr.msk.f32.mxu1 %vm871_vm2, %v1755_v22  ;;  %v2216_v22 = vsel %vm4793_vm6, %v4781_v50, 0.0  ;;  %v2464_v9 = vsel %vm5002_vm14, %v5169_v1, 0.0  ;;  %v2466_v1 = vsel %vm5805_vm8, %v5052_v0, 0.0  ;;  %v2228_v0 = vsel %vm5008_vm15, %v4908_v18, 0.0 }
 0x320   :  { %3780 = vmatmul.mubr.msk.f32.gmra.mxu0 %vm871_vm2, %v5195_v49 }
 0x321   :  { %3782 = vmatprep.mubr.msk.f32.mxu0 %vm871_vm2, %v4692_v6  ;;  %v1758_v6 = vsel %vm4904_vm12, %v4839_v7, 0.0  ;;  %v2457_v7 = vld [vmem:[#allocation2 + $0xaf] sm:$0xff] }
 0x322   :  { %3760 = vmatmul.mubr.msk.f32.gmra.mxu1 %vm871_vm2, %v1756_v48  ;;  %v2217_v48 = vsel %vm5806_vm0, %v4822_v55, 0.0 }
 0x323   :  { %3762 = vmatprep.mubr.msk.f32.mxu1 %vm871_vm2, %v1757_v26  ;;  %v5247_v26 = vld [vmem:[#allocation2 + $0xa8] sm:$0xff] }
 0x324   :  { %3783 = vmatmul.mubr.msk.f32.gmra.mxu0 %vm871_vm2, %v4707_v23 }
 0x325   :  { %3785 = vmatprep.mubr.msk.f32.mxu0 %vm871_vm2, %v4727_v13 }
 0x326   :  { %3763 = vmatmul.mubr.msk.f32.gmra.mxu1 %vm871_vm2, %v1758_v6  ;;  %v2218_v6 = vsel %vm4859_vm10, %v4873_v29, 0.0 }
 0x327   :  { %3765 = vmatprep.mubr.msk.f32.mxu1 %vm871_vm2, %v1759_v44  ;;  %v5807_v44 = vld [vmem:[#allocation3_spill] sm:$0xff] }
 0x328   :  { %3786 = vmatmul.mubr.msk.f32.gmra.mxu0 %vm871_vm2, %v4762_v30 }
 0x329   :  { %3788 = vmatprep.mubr.msk.f32.mxu0 %vm871_vm2, %v4791_v33 }
 0x32a   :  { %3766 = vmatmul.mubr.msk.f32.gmra.mxu1 %vm871_vm2, %v1760_v41  ;;  %v2219_v41 = vsel %vm4925_vm13, %v5807_v44, 0.0 }
 0x32b   :  { %3796 = vmatprep.mubr.msk.f32.mxu1 %vm871_vm2, %v2215_v14  ;;  %v2220_v14 = vsel %vm5008_vm15, %v4956_v19, 0.0 }
 0x32c   :  { %3789 = vmatmul.mubr.msk.f32.gmra.mxu0 %vm871_vm2, %v4837_v5 }
 0x32d   :  { %3791 = vmatprep.mubr.msk.f32.mxu0 %vm871_vm2, %v4886_v52 }
 0x32e   :  { %3797 = vmatmul.mubr.msk.f32.vlgmr.msra.gmra.mxu1 %vm871_vm2, %v2216_v22  ;;  %v5810_v22 = vld [vmem:[#allocation4_spill] sm:$0xff] }
 0x32f   :  { %3799 = vmatprep.mubr.msk.f32.mxu1 %vm871_vm2, %v2217_v48  ;;  %3847 = vmatpush3.msra.mxu1 %v3365_v16  ;;  %v5808_v16 = vsel %vm4729_vm3, %v4779_v47, 0.0  ;;  %v2221_v48 = vsel %vm5047_vm1, %v5810_v22, 0.0  ;;  %v2206_v47 = vld [vmem:[#allocation2 + $0x49] sm:$0xff]  ;;  %v5826_v11 = vsel %vm5008_vm15, %v5810_v22, 0.0 }
 0x330   :  { %3792 = vmatmul.mubr.msk.f32.gmra.mxu0 %vm871_vm2, %v5247_v26 }
 0x331   :  { %3822 = vmatprep.mubr.msk.f32.mxu0 %vm871_vm2, %v2458_v62  ;;  %v2222_v62 = vsel %vm5058_vm11, %v2206_v47, 0.0 }
 0x332   :  { %3800 = vmatmul.mubr.msk.f32.gmra.mxu1 %vm871_vm2, %v2218_v6  ;;  %v2223_v6 = vsel %vm4743_vm4, %v5077_v34, 0.0  ;;  %v2225_v34 = vsel %vm5806_vm0, %v4789_v2, 0.0  ;;  %vm5814_vm4 = vnez %v5800_v31  ;;  %v2919_v31 = vld [vmem:[#allocation2 + $0x51] sm:$0xff] }
 0x333   :  { %3802 = vmatprep.mubr.msk.f32.mxu1 %vm871_vm2, %v2219_v41  ;;  %v2449_v41 = vld [vmem:[#allocation2 + $0x4f] sm:$0xff]  ;;  %v2473_v40 = vsel %vm5814_vm4, %v2457_v7, 0.0 }
 0x334   :  { %3823 = vmatmul.mubr.msk.f32.vlgmr.msra.gmra.mxu0 %vm871_vm2, %v5808_v16  ;;  %v2224_v16 = vsel %vm4793_vm6, %v4735_v38, 0.0 }
 0x335   :  { %3873 = vmatpush3.msra.mxu0 %v3382_v3  ;;  %3825 = vmatprep.mubr.msk.f32.mxu0 %vm871_vm2, %v5809_v43  ;;  %v5811_v3 = vsel %vm4808_vm7, %v4871_v36, 0.0  ;;  %v5813_v36 = vsel %vm4904_vm12, %v4954_v60, 0.0  ;;  %v2465_v60 = vsel %vm5814_vm4, %v2449_v41, 0.0  ;;  %v2226_v43 = vsel %vm4859_vm10, %v4816_v8, 0.0 }
 0x336   :  { %3803 = vmatmul.mubr.msk.f32.gmra.mxu1 %vm871_vm2, %v2220_v14  ;;  %v2227_v14 = vsel %vm4925_vm13, %v4841_v10, 0.0 }
 0x337   :  { %3805 = vmatprep.mubr.msk.f32.mxu1 %vm871_vm2, %v2221_v48  ;;  %v5815_v48 = vsel %vm4729_vm3, %v4733_v61, 0.0  ;;  %v5817_v61 = vsel %vm4808_vm7, %v4797_v28, 0.0  ;;  %v5819_v28 = vsel %vm4904_vm12, %v4888_v25, 0.0  ;;  %vm5820_vm3 = vnez %v5774_v46 }
 0x338   :  { %3826 = vmatmul.mubr.msk.f32.gmra.mxu0 %vm871_vm2, %v5811_v3  ;;  %v2214_v3 = vld [vmem:[#allocation2 + $0xa9] sm:$0xff]  ;;  %v5829_v46 = vsel %vm5806_vm0, %v4816_v8, 0.0 }
 0x339   :  { %3828 = vmatprep.mubr.msk.f32.mxu0 %vm871_vm2, %v5812_v32  ;;  %v2230_v59 = vsel %vm5058_vm11, %v2214_v3, 0.0  ;;  %v2942_v8 = vsel %vm5047_vm1, %v2214_v3, 0.0 }
 0x33a   :  { %3806 = vmatmul.mubr.msk.f32.gmra.mxu1 %vm871_vm2, %v2222_v62 }
 0x33b   :  { %3808 = vmatprep.mubr.msk.f32.mxu1 %vm871_vm2, %v2223_v6 }
 0x33c   :  { %3829 = vmatmul.mubr.msk.f32.gmra.mxu0 %vm871_vm2, %v5813_v36 }
 0x33d   :  { %3831 = vmatprep.mubr.msk.f32.mxu0 %vm871_vm2, %v2464_v9 }
 0x33e   :  { %3809 = vmatmul.mubr.msk.f32.gmra.mxu1 %vm871_vm2, %v2224_v16 }
 0x33f   :  { %3811 = vmatprep.mubr.msk.f32.mxu1 %vm871_vm2, %v2225_v34 }
 0x340   :  { %3832 = vmatmul.mubr.msk.f32.gmra.mxu0 %vm871_vm2, %v2465_v60 }
 0x341   :  { %3834 = vmatprep.mubr.msk.f32.mxu0 %vm871_vm2, %v2466_v1 }
 0x342   :  { %3812 = vmatmul.mubr.msk.f32.gmra.mxu1 %vm871_vm2, %v2226_v43 }
 0x343   :  { %3814 = vmatprep.mubr.msk.f32.mxu1 %vm871_vm2, %v2227_v14 }
 0x344   :  { %3835 = vmatmul.mubr.msk.f32.gmra.mxu0 %vm871_vm2, %v5815_v48 }
 0x345   :  { %3837 = vmatprep.mubr.msk.f32.mxu0 %vm871_vm2, %v5816_v20 }
 0x346   :  { %3815 = vmatmul.mubr.msk.f32.gmra.mxu1 %vm871_vm2, %v2228_v0 }
 0x347   :  { %3817 = vmatprep.mubr.msk.f32.mxu1 %vm871_vm2, %v2229_v4 }
 0x348   :  { %3838 = vmatmul.mubr.msk.f32.gmra.mxu0 %vm871_vm2, %v5817_v61 }
 0x349   :  { %3840 = vmatprep.mubr.msk.f32.mxu0 %vm871_vm2, %v5818_v17 }
 0x34a   :  { %3818 = vmatmul.mubr.msk.f32.gmra.mxu1 %vm871_vm2, %v2230_v59 }
 0x34b   :  { %3848 = vmatprep.mubr.msk.f32.mxu1 %vm871_vm2, %v4751_v53  ;;  %v5821_v53 = vsel %vm5820_vm3, %v4781_v50, 0.0  ;;  %v2692_v50 = vld [vmem:[#allocation2 + $0x50] sm:$0xff] }
 0x34c   :  { %3841 = vmatmul.mubr.msk.f32.gmra.mxu0 %vm871_vm2, %v5819_v28 }
 0x34d   :  { %3843 = vmatprep.mubr.msk.f32.mxu0 %vm871_vm2, %v2472_v42 }
 0x34e   :  { %3849 = vmatmul.mubr.msk.f32.vlgmr.msra.gmra.mxu1 %vm871_vm2, %v4777_v63  ;;  %v5822_v63 = vsel %vm4793_vm6, %v4822_v55, 0.0  ;;  %v5825_v55 = vsel %vm4925_vm13, %v4956_v19, 0.0  ;;  %v2935_v19 = vsel %vm5058_vm11, %v2919_v31, 0.0 }
 0x34f   :  { %3851 = vmatprep.mubr.msk.f32.mxu1 %vm871_vm2, %v4818_v12  ;;  %v5823_v12 = vsel %vm5806_vm0, %v4873_v29, 0.0 }
 0x350   :  { %3844 = vmatmul.mubr.msk.f32.gmra.mxu0 %vm871_vm2, %v2473_v40 }
 0x351   :  { %3874 = vmatprep.mubr.msk.f32.mxu0 %vm871_vm2, %v5821_v53 }
 0x352   :  { %3852 = vmatmul.mubr.msk.f32.gmra.mxu1 %vm871_vm2, %v4863_v21  ;;  %v2934_v21 = vsel %vm5047_vm1, %v2206_v47, 0.0 }
 0x353   :  { %3854 = vmatprep.mubr.msk.f32.mxu1 %vm871_vm2, %v4910_v24  ;;  %v5824_v24 = vsel %vm4859_vm10, %v5807_v44, 0.0 }
 0x354   :  { %3875 = vmatmul.mubr.msk.f32.vlgmr.msra.gmra.mxu0 %vm871_vm2, %v5822_v63 }
 0x355   :  { %3877 = vmatprep.mubr.msk.f32.mxu0 %vm871_vm2, %v5823_v12 }
 0x356   :  { %3855 = vmatmul.mubr.msk.f32.gmra.mxu1 %vm871_vm2, %v4950_v58 }
 0x357   :  { %3857 = vmatprep.mubr.msk.f32.mxu1 %vm871_vm2, %v5195_v49 }
 0x358   :  { %3878 = vmatmul.mubr.msk.f32.gmra.mxu0 %vm871_vm2, %v5824_v24 }
 0x359   :  { %3880 = vmatprep.mubr.msk.f32.mxu0 %vm871_vm2, %v5825_v55 }
 0x35a   :  { %3858 = vmatmul.mubr.msk.f32.gmra.mxu1 %vm871_vm2, %v2692_v50 }
 0x35b   :  { %3860 = vmatprep.mubr.msk.f32.mxu1 %vm871_vm2, %v4707_v23  ;;  %v5827_v23 = vsel %vm5820_vm3, %v4735_v38, 0.0  ;;  %v2700_v38 = vld [vmem:[#allocation2 + $0xb0] sm:$0xff] }
 0x35c   :  { %3881 = vmatmul.mubr.msk.f32.gmra.mxu0 %vm871_vm2, %v5826_v11 }
 0x35d   :  { %3883 = vmatprep.mubr.msk.f32.mxu0 %vm871_vm2, %v2934_v21 }
 0x35e   :  { %3861 = vmatmul.mubr.msk.f32.gmra.mxu1 %vm871_vm2, %v4727_v13  ;;  %v5828_v13 = vsel %vm4793_vm6, %v4789_v2, 0.0  ;;  %v5831_v2 = vsel %vm4925_vm13, %v4908_v18, 0.0 }
 0x35f   :  { %3863 = vmatprep.mubr.msk.f32.mxu1 %vm871_vm2, %v4762_v30  ;;  %v5830_v30 = vsel %vm4859_vm10, %v4841_v10, 0.0 }
 0x360   :  { %3884 = vmatmul.mubr.msk.f32.gmra.mxu0 %vm871_vm2, %v2935_v19 }
 0x361   :  { %3886 = vmatprep.mubr.msk.f32.mxu0 %vm871_vm2, %v5827_v23 }
 0x362   :  { %3864 = vmatmul.mubr.msk.f32.gmra.mxu1 %vm871_vm2, %v4791_v33  ;;  %v2927_v33 = vld [vmem:[#allocation2 + $0xb1] sm:$0xff] }
 0x363   :  { %3866 = vmatprep.mubr.msk.f32.mxu1 %vm871_vm2, %v4837_v5  ;;  %v2943_v57 = vsel %vm5058_vm11, %v2927_v33, 0.0 }
 0x364   :  { %3887 = vmatmul.mubr.msk.f32.gmra.mxu0 %vm871_vm2, %v5828_v13 }
 0x365   :  { %3889 = vmatprep.mubr.msk.f32.mxu0 %vm871_vm2, %v5829_v46 }
 0x366   :  { %3867 = vmatmul.mubr.msk.f32.gmra.mxu1 %vm871_vm2, %v4886_v52 }
 0x367   :  { %3869 = vmatprep.mubr.msk.f32.mxu1 %vm871_vm2, %v5247_v26 }
 0x368   :  { %3890 = vmatmul.mubr.msk.f32.gmra.mxu0 %vm871_vm2, %v5830_v30 }
 0x369   :  { %3892 = vmatprep.mubr.msk.f32.mxu0 %vm871_vm2, %v5831_v2 }
 0x36a   :  { %3870 = vmatmul.mubr.msk.f32.gmra.mxu1 %vm871_vm2, %v2700_v38 }
 0x36c   :  { %3893 = vmatmul.mubr.msk.f32.gmra.mxu0 %vm871_vm2, %v5832_v35 }
 0x36d   :  { %3895 = vmatprep.mubr.msk.f32.mxu0 %vm871_vm2, %v2942_v8 }
 0x370   :  { %3896 = vmatmul.mubr.msk.f32.gmra.mxu0 %vm871_vm2, %v2943_v57 }
 0x392   :  { %v3680_v18 = vpop.f32.mrf.mxu1 }
 0x394   :  { %v1238_v5 = vpop.f32.mrf.mxu1 }
 0x398   :  { %v3668_v10 = vpop.f32.mrf.mxu0 }
 0x39a   :  { %v3683_v15 = vpop.f32.mrf.mxu1  ;;  %v1198_v29 = vpop.f32.mrf.mxu0 }
 0x39c   :  { %v1248_v58 = vpop.f32.mrf.mxu1 }
 0x3a0   :  { %v3671_v52 = vpop.f32.mrf.mxu0 }
 0x3a2   :  { %v3686_v25 = vpop.f32.mrf.mxu1  ;;  %v1208_v54 = vpop.f32.mrf.mxu0 }
 0x3a4   :  { %v1258_v39 = vpop.f32.mrf.mxu1 }
 0x3a9   :  { %v3674_v51 = vpop.f32.mrf.mxu0 }
 0x3aa   :  { %v3689_v37 = vpop.f32.mrf.mxu1 }
 0x3ab   :  { %v1218_v49 = vpop.f32.mrf.mxu0 }
 0x3ac   :  { %v1268_v45 = vpop.f32.mrf.mxu1 }
 0x3ae   :  { %v3694_v27 = vpop.f32.mrf.mxu1 }
 0x3af   :  { %v1397_v26 = vadd.f32 %v3694_v27, %v3668_v10 }
 0x3b0   :  { %v3677_v56 = vpop.f32.mrf.mxu0  ;;  %v1391_v44 = vpop.f32.mrf.mxu1 }
 0x3b1   :  { %v1392_v22 = vadd.f32 %v1391_v44, %v1198_v29 }
 0x3b2   :  { %v1228_v47 = vpop.f32.mrf.mxu0  ;;  %v3697_v32 = vpop.f32.mrf.mxu1 }
 0x3b3   :  { %v1407_v62 = vadd.f32 %v3697_v32, %v3671_v52 }
 0x3b4   :  { %v3720_v6 = vpop.f32.mrf.mxu0  ;;  %v1401_v36 = vpop.f32.mrf.mxu1 }
 0x3b5   :  { %v5476_v9 = vadd.f32 %v3720_v6, %v1397_v26  ;;  %v1402_v41 = vadd.f32 %v1401_v36, %v1208_v54 }
 0x3b6   :  { %v1634_v16 = vpop.f32.mrf.mxu0  ;;  %v3700_v34 = vpop.f32.mrf.mxu1 }
 0x3b7   :  { %v5478_v60 = vadd.f32 %v1634_v16, %v1392_v22  ;;  %v1417_v1 = vadd.f32 %v3700_v34, %v3674_v51 }
 0x3b8   :  { %v3723_v43 = vpop.f32.mrf.mxu0  ;;  %v1411_v14 = vpop.f32.mrf.mxu1 }
 0x3b9   :  { %v5480_v48 = vadd.f32 %v3723_v43, %v1407_v62  ;;  %v1412_v20 = vadd.f32 %v1411_v14, %v1218_v49 }
 0x3ba   :  { %v1644_v0 = vpop.f32.mrf.mxu0  ;;  %v3703_v4 = vpop.f32.mrf.mxu1 }
 0x3bb   :  { %v5482_v3 = vadd.f32 %v1644_v0, %v1402_v41  ;;  %v1427_v61 = vadd.f32 %v3703_v4, %v3677_v56 }
 0x3bc   :  { %v3726_v17 = vpop.f32.mrf.mxu0  ;;  %v1421_v59 = vpop.f32.mrf.mxu1 }
 0x3bd   :  { %v5484_v28 = vadd.f32 %v3726_v17, %v1417_v1  ;;  %v1422_v42 = vadd.f32 %v1421_v59, %v1228_v47 }
 0x3be   :  { %v1654_v7 = vpop.f32.mrf.mxu0  ;;  %v3706_v40 = vpop.f32.mrf.mxu1 }
 0x3bf   :  { %v5486_v53 = vadd.f32 %v1654_v7, %v1412_v20  ;;  %v1437_v63 = vadd.f32 %v3706_v40, %v3680_v18 }
 0x3c0   :  { %v3729_v12 = vpop.f32.mrf.mxu0  ;;  %v1431_v50 = vpop.f32.mrf.mxu1 }
 0x3c1   :  { %v5488_v24 = vadd.f32 %v3729_v12, %v1427_v61  ;;  %v1432_v55 = vadd.f32 %v1431_v50, %v1238_v5 }
 0x3c2   :  { %v1664_v31 = vpop.f32.mrf.mxu0  ;;  %v3709_v11 = vpop.f32.mrf.mxu1 }
 0x3c3   :  { %v5490_v21 = vadd.f32 %v1664_v31, %v1422_v42  ;;  %v1447_v19 = vadd.f32 %v3709_v11, %v3683_v15 }
 0x3c4   :  { %v3732_v23 = vpop.f32.mrf.mxu0  ;;  %v1441_v13 = vpop.f32.mrf.mxu1 }
 0x3c5   :  { %v5492_v46 = vadd.f32 %v3732_v23, %v1437_v63  ;;  %v1442_v38 = vadd.f32 %v1441_v13, %v1248_v58 }
 0x3c6   :  { %v1674_v30 = vpop.f32.mrf.mxu0  ;;  %v3712_v2 = vpop.f32.mrf.mxu1 }
 0x3c7   :  { %v5494_v33 = vadd.f32 %v1674_v30, %v1432_v55  ;;  %v1457_v35 = vadd.f32 %v3712_v2, %v3686_v25 }
 0x3c8   :  { %v3735_v8 = vpop.f32.mrf.mxu0  ;;  %v1451_v57 = vpop.f32.mrf.mxu1 }
 0x3c9   :  { %v5496_v18 = vadd.f32 %v3735_v8, %v1447_v19  ;;  %v1452_v5 = vadd.f32 %v1451_v57, %v1258_v39 }
 0x3ca   :  { %v1684_v10 = vpop.f32.mrf.mxu0  ;;  %v3715_v29 = vpop.f32.mrf.mxu1 }
 0x3cb   :  { %v5498_v52 = vadd.f32 %v1684_v10, %v1442_v38  ;;  %v1467_v15 = vadd.f32 %v3715_v29, %v3689_v37 }
 0x3cc   :  { %v3738_v54 = vpop.f32.mrf.mxu0  ;;  %v1461_v51 = vpop.f32.mrf.mxu1 }
 0x3cd   :  { %v5500_v49 = vadd.f32 %v3738_v54, %v1457_v35  ;;  %v1462_v58 = vadd.f32 %v1461_v51, %v1268_v45 }
 0x3ce   :  { %v1694_v27 = vpop.f32.mrf.mxu0  ;;  %v5502_v26 = vpop.f32.mrf.mxu1 }
 0x3cf   :  { %v5504_v56 = vadd.f32 %v1694_v27, %v1452_v5 }
 0x3d0   :  { %v3741_v25 = vpop.f32.mrf.mxu0  ;;  %v5506_v44 = vpop.f32.mrf.mxu1 }
 0x3d1   :  { %v5508_v22 = vadd.f32 %v3741_v25, %v1467_v15 }
 0x3d2   :  { %v1704_v39 = vpop.f32.mrf.mxu0  ;;  %v5510_v47 = vpop.f32.mrf.mxu1 }
 0x3d3   :  { %5833 = vst [vmem:[#allocation3_spill] sm:$0xff] %v5508_v22  ;;  %v5512_v32 = vadd.f32 %v1704_v39, %v1462_v58 }
 0x3d4   :  { %v3772_v37 = vpop.f32.mrf.mxu0  ;;  %v5514_v62 = vpop.f32.mrf.mxu1 }
 0x3d5   :  { %5834 = vst [vmem:[#allocation4_spill] sm:$0xff] %v5512_v32 }
 0x3d6   :  { %v5516_v6 = vpop.f32.mrf.mxu0  ;;  %v5518_v45 = vpop.f32.mrf.mxu1 }
 0x3d8   :  { %v5520_v36 = vpop.f32.mrf.mxu0  ;;  %v5522_v41 = vpop.f32.mrf.mxu1 }
 0x3da   :  { %v5524_v16 = vpop.f32.mrf.mxu0  ;;  %v5526_v34 = vpop.f32.mrf.mxu1 }
 0x3dc   :  { %v5528_v1 = vpop.f32.mrf.mxu0  ;;  %v5530_v43 = vpop.f32.mrf.mxu1 }
 0x3de   :  { %v5532_v14 = vpop.f32.mrf.mxu0  ;;  %v5534_v20 = vpop.f32.mrf.mxu1 }
 0x3e0   :  { %v5536_v0 = vpop.f32.mrf.mxu0  ;;  %v5538_v4 = vpop.f32.mrf.mxu1 }
 0x3e2   :  { %v5540_v61 = vpop.f32.mrf.mxu0  ;;  %v5542_v17 = vpop.f32.mrf.mxu1 }
 0x3e4   :  { %v5544_v59 = vpop.f32.mrf.mxu0  ;;  %v5546_v42 = vpop.f32.mrf.mxu1 }
 0x3e6   :  { %v5548_v7 = vpop.f32.mrf.mxu0  ;;  %v5550_v40 = vpop.f32.mrf.mxu1 }
 0x3e8   :  { %v5552_v63 = vpop.f32.mrf.mxu0  ;;  %v5554_v12 = vpop.f32.mrf.mxu1 }
 0x3ea   :  { %v5556_v50 = vpop.f32.mrf.mxu0  ;;  %v5558_v55 = vpop.f32.mrf.mxu1 }
 0x3eb   :  { %5835 = vst [vmem:[#allocation5_spill] sm:$0xff] %v5556_v50  ;;  %5836 = vst [vmem:[#allocation6_spill] sm:$0xff] %v5558_v55 }
 0x3ec   :  { %v5560_v31 = vpop.f32.mrf.mxu0  ;;  %v5562_v11 = vpop.f32.mrf.mxu1 }
 0x3ed   :  { %5837 = vst [vmem:[#allocation7_spill] sm:$0xff] %v5560_v31  ;;  %5838 = vst [vmem:[#allocation8_spill] sm:$0xff] %v5562_v11 }
 0x3ee   :  { %v5564_v19 = vpop.f32.mrf.mxu0  ;;  %v3798_v23 = vpop.f32.mrf.mxu1 }
 0x3ef   :  { %5839 = vst [vmem:[#allocation9_spill] sm:$0xff] %v5564_v19 }
 0x3f0   :  { %v5566_v13 = vpop.f32.mrf.mxu0  ;;  %v2347_v38 = vpop.f32.mrf.mxu1 }
 0x3f1   :  { %5840 = vst [vmem:[#allocation10_spill] sm:$0xff] %v5566_v13 }
 0x3f2   :  { %v5568_v30 = vpop.f32.mrf.mxu0  ;;  %v3801_v2 = vpop.f32.mrf.mxu1 }
 0x3f3   :  { %5841 = vst [vmem:[#allocation11_spill] sm:$0xff] %v5568_v30 }
 0x3f4   :  { %v3824_v35 = vpop.f32.mrf.mxu0  ;;  %v2357_v8 = vpop.f32.mrf.mxu1 }
 0x3f6   :  { %v2590_v57 = vpop.f32.mrf.mxu0  ;;  %v5570_v5 = vpop.f32.mrf.mxu1 }
 0x3f8   :  { %v3827_v10 = vpop.f32.mrf.mxu0  ;;  %v5572_v29 = vpop.f32.mrf.mxu1 }
 0x3fa   :  { %v2600_v15 = vpop.f32.mrf.mxu0  ;;  %v5574_v54 = vpop.f32.mrf.mxu1 }
 0x3fc   :  { %v5576_v51 = vpop.f32.mrf.mxu0  ;;  %v5578_v58 = vpop.f32.mrf.mxu1 }
 0x3fe   :  { %v5580_v27 = vpop.f32.mrf.mxu0  ;;  %v5582_v25 = vpop.f32.mrf.mxu1 }
 0x3ff   :  { %5842 = vst [vmem:[#allocation12_spill] sm:$0xff] %v5582_v25 }
 0x400   :  { %v5584_v39 = vpop.f32.mrf.mxu0  ;;  %v5586_v30 = vpop.f32.mrf.mxu1 }
 0x401   :  { %5843 = vst [vmem:[#allocation13_spill] sm:$0xff] %v5584_v39  ;;  %5844 = vst [vmem:[#allocation14_spill] sm:$0xff] %v5586_v30  ;;  %v1957_v30 = vadd.f32 %v5502_v26, %v5476_v9  ;;  %v1961_v26 = vadd.f32 %v5518_v45, %v5484_v28  ;;  %v1962_v28 = vadd.f32 %v5530_v43, %v5490_v21 }
 0x402   :  { %v5588_v13 = vpop.f32.mrf.mxu0  ;;  %v5590_v19 = vpop.f32.mrf.mxu1  ;;  %v1967_v21 = vadd.f32 %v5542_v17, %v5496_v18 }
 0x403   :  { %5845 = vst [vmem:[#allocation15_spill] sm:$0xff] %v5590_v19 }
 0x404   :  { %v5592_v11 = vpop.f32.mrf.mxu0  ;;  %v5594_v32 = vpop.f32.mrf.mxu1 }
 0x405   :  { %5846 = vst [vmem:[#allocation16_spill] sm:$0xff] %v5592_v11  ;;  %5847 = vst [vmem:[#allocation17_spill] sm:$0xff] %v5594_v32  ;;  %v1956_v32 = vadd.f32 %v5506_v44, %v5478_v60  ;;  %v1960_v60 = vadd.f32 %v5522_v41, %v5486_v53  ;;  %v1965_v53 = vadd.f32 %v5534_v20, %v5492_v46 }
 0x406   :  { %v5596_v31 = vpop.f32.mrf.mxu0  ;;  %v5598_v55 = vpop.f32.mrf.mxu1 }
 0x407   :  { %5848 = vst [vmem:[#allocation18_spill] sm:$0xff] %v5596_v31  ;;  %5849 = vst [vmem:[#allocation19_spill] sm:$0xff] %v5598_v55  ;;  %v2184_v31 = vadd.f32 %v3772_v37, %v1957_v30  ;;  %v1959_v55 = vadd.f32 %v5510_v47, %v5480_v48  ;;  %v1963_v37 = vadd.f32 %v5526_v34, %v5488_v24 }
 0x408   :  { %v5600_v22 = vpop.f32.mrf.mxu0  ;;  %v5602_v50 = vpop.f32.mrf.mxu1  ;;  %v1964_v34 = vadd.f32 %v5538_v4, %v5494_v33  ;;  %v2192_v46 = vadd.f32 %v5544_v59, %v1965_v53  ;;  %v1969_v59 = vadd.f32 %v5550_v40, %v5500_v49 }
 0x409   :  { %5850 = vst [vmem:[#allocation20_spill] sm:$0xff] %v5600_v22  ;;  %5851 = vst [vmem:[#allocation21_spill] sm:$0xff] %v5602_v50  ;;  %v2427_v9 = vadd.f32 %v3798_v23, %v2184_v31  ;;  %v2190_v41 = vadd.f32 %v5536_v0, %v1963_v37  ;;  %v1966_v0 = vadd.f32 %v5546_v42, %v5498_v52 }
 0x40a   :  { %v5604_v25 = vpop.f32.mrf.mxu0  ;;  %v5606_v39 = vpop.f32.mrf.mxu1 }
 0x40b   :  { %5852 = vst [vmem:[#allocation22_spill] sm:$0xff] %v5604_v25  ;;  %5853 = vst [vmem:[#allocation23_spill] sm:$0xff] %v5606_v39  ;;  %v1958_v39 = vadd.f32 %v5514_v62, %v5482_v3  ;;  %v2183_v25 = vadd.f32 %v5516_v6, %v1956_v32  ;;  %v2670_v62 = vadd.f32 %v3824_v35, %v2427_v9 }
 0x40c   :  { %v5610_v19 = vpop.f32.mrf.mxu0  ;;  %v5612_v11 = vpop.f32.mrf.mxu1  ;;  %v2188_v32 = vadd.f32 %v5528_v1, %v1961_v26  ;;  %v2187_v6 = vadd.f32 %v5532_v14, %v1960_v60  ;;  %v2189_v1 = vadd.f32 %v5540_v61, %v1962_v28  ;;  %v1968_v26 = vadd.f32 %v5554_v12, %v5504_v56 }
 0x40d   :  { %5854 = vst [vmem:[#allocation24_spill] sm:$0xff] %v5612_v11  ;;  %v2186_v11 = vadd.f32 %v5520_v36, %v1959_v55  ;;  %v2185_v47 = vadd.f32 %v5524_v16, %v1958_v39  ;;  %v2426_v3 = vadd.f32 %v2347_v38, %v2183_v25 }
 0x40e   :  { %v5618_v22 = vpop.f32.mrf.mxu0  ;;  %v3850_v50 = vpop.f32.mrf.mxu1  ;;  %v2431_v33 = vadd.f32 %v5570_v5, %v2188_v32  ;;  %v5856_v32 = vld [vmem:[#allocation5_spill] sm:$0xff] }
 0x40f   :  { %v2429_v16 = vadd.f32 %v3801_v2, %v2186_v11  ;;  %v2669_v55 = vadd.f32 %v2590_v57, %v2426_v3  ;;  %v2897_v24 = vadd.f32 %v3850_v50, %v2670_v62  ;;  %v2428_v43 = vadd.f32 %v2357_v8, %v2185_v47 }
 0x410   :  { %v5628_v44 = vpop.f32.mrf.mxu0  ;;  %v2817_v48 = vpop.f32.mrf.mxu1  ;;  %v2191_v50 = vadd.f32 %v5548_v7, %v1964_v34  ;;  %v2430_v2 = vadd.f32 %v5572_v29, %v2187_v6  ;;  %v2674_v35 = vadd.f32 %v5576_v51, %v2431_v33  ;;  %v2193_v28 = vadd.f32 %v5856_v32, %v1966_v0  ;;  %v5857_v6 = vld [vmem:[#allocation12_spill] sm:$0xff]  ;;  %v5859_v34 = vld [vmem:[#allocation6_spill] sm:$0xff]  ;;  %v5862_v33 = vld [vmem:[#allocation7_spill] sm:$0xff] }
 0x411   :  { %v2672_v20 = vadd.f32 %v3827_v10, %v2429_v16  ;;  %v2896_v23 = vadd.f32 %v2817_v48, %v2669_v55  ;;  %v2671_v4 = vadd.f32 %v2600_v15, %v2428_v43  ;;  %v2194_v10 = vadd.f32 %v5552_v63, %v1967_v21  ;;  %v5860_v21 = vld [vmem:[#allocation14_spill] sm:$0xff] }
 0x412   :  { %v5639_v45 = vpop.f32.mrf.mxu0  ;;  %v3853_v36 = vpop.f32.mrf.mxu1  ;;  %v2433_v15 = vadd.f32 %v5574_v54, %v2190_v41  ;;  %v2673_v25 = vadd.f32 %v5580_v27, %v2430_v2  ;;  %v2432_v63 = vadd.f32 %v5578_v58, %v2189_v1  ;;  %v5855_v54 = vld [vmem:[#allocation13_spill] sm:$0xff]  ;;  %v2435_v56 = vadd.f32 %v5857_v6, %v2192_v46  ;;  %v5872_v6 = vld [vmem:[#allocation10_spill] sm:$0xff] }
 0x413   :  { %v2899_v30 = vadd.f32 %v3853_v36, %v2672_v20  ;;  %v2434_v43 = vadd.f32 %v5860_v21, %v2191_v50 }
 0x414   :  { %v3876_v14 = vpop.f32.mrf.mxu0  ;;  %v2827_v31 = vpop.f32.mrf.mxu1  ;;  %v2676_v60 = vadd.f32 %v5855_v54, %v2433_v15  ;;  %v2675_v12 = vadd.f32 %v5588_v13, %v2432_v63  ;;  %v5870_v54 = vld [vmem:[#allocation19_spill] sm:$0xff] }
 0x415   :  { %v3140_v38 = vadd.f32 %v3876_v14, %v2897_v24  ;;  %v2898_v8 = vadd.f32 %v2827_v31, %v2671_v4  ;;  %v5858_v24 = vld [vmem:[#allocation3_spill] sm:$0xff]  ;;  %v5861_v14 = vld [vmem:[#allocation16_spill] sm:$0xff]  ;;  %v2196_v4 = vadd.f32 %v5862_v33, %v1969_v59  ;;  %v5867_v59 = vld [vmem:[#allocation17_spill] sm:$0xff] }
 0x416   :  { %v3060_v61 = vpop.f32.mrf.mxu0  ;;  %v3856_v11 = vpop.f32.mrf.mxu1  ;;  %v1971_v1 = vadd.f32 %v5859_v34, %v5858_v24  ;;  %v2678_v31 = vadd.f32 %v5861_v14, %v2435_v56  ;;  %v5874_v34 = vld [vmem:[#allocation11_spill] sm:$0xff] }
 0x417   :  { %vm3156_vm4 = vcmp.ge.f32.partialorder %v3140_v38, 0.0  ;;  %v3172_v18 = vmul.f32 0.2, %v3140_v38  ;;  %v3139_v17 = vadd.f32 %v3060_v61, %v2896_v23  ;;  %v2901_v49 = vadd.f32 %v3856_v11, %v2674_v35  ;;  %v5863_v61 = vld [vmem:[#allocation15_spill] sm:$0xff] }
 0x418   :  { %v3879_v52 = vpop.f32.mrf.mxu0  ;;  %v2837_v42 = vpop.f32.mrf.mxu1  ;;  %v2437_v11 = vadd.f32 %v5863_v61, %v2194_v10  ;;  %v5868_v10 = vld [vmem:[#allocation20_spill] sm:$0xff]  ;;  %v2198_v56 = vadd.f32 %v5872_v6, %v1971_v1 }
 0x419   :  { %v3188_v7 = vsel %vm3156_vm4, %v3140_v38, %v3172_v18  ;;  %vm3155_vm5 = vcmp.ge.f32.partialorder %v3139_v17, 0.0  ;;  %v3171_v57 = vmul.f32 0.2, %v3139_v17  ;;  %v3142_v5 = vadd.f32 %v3879_v52, %v2899_v30  ;;  %v5864_v30 = vld [vmem:[#allocation18_spill] sm:$0xff] }
 0x41a   :  { %3204 = vst.msk [vmem:[%s5758_s5 + $0x8] sm:$0xff] %vm871_vm2, %v3188_v7  ;;  %v3070_v40 = vpop.f32.mrf.mxu0  ;;  %v3859_v29 = vpop.f32.mrf.mxu1  ;;  %v2900_v27 = vadd.f32 %v2837_v42, %v2673_v25  ;;  %v2677_v50 = vadd.f32 %v5864_v30, %v2434_v43  ;;  %v5865_v42 = vld [vmem:[#allocation4_spill] sm:$0xff]  ;;  %v2680_v15 = vadd.f32 %v5868_v10, %v2437_v11  ;;  %v5875_v43 = vld [vmem:[#allocation23_spill] sm:$0xff] }
 0x41b   :  { %v3187_v51 = vsel %vm3155_vm5, %v3139_v17, %v3171_v57  ;;  %vm3158_vm6 = vcmp.ge.f32.partialorder %v3142_v5, 0.0  ;;  %v3174_v39 = vmul.f32 0.2, %v3142_v5  ;;  %v3141_v9 = vadd.f32 %v3070_v40, %v2898_v8  ;;  %v5866_v7 = vld [vmem:[#allocation8_spill] sm:$0xff] }
 0x41c   :  { %3203 = vst.msk [vmem:[%s5758_s5] sm:$0xff] %vm871_vm2, %v3187_v51  ;;  %v3882_v48 = vpop.f32.mrf.mxu0  ;;  %v2847_v47 = vpop.f32.mrf.mxu1  ;;  %v2903_v58 = vadd.f32 %v3859_v29, %v2676_v60  ;;  %v1970_v57 = vadd.f32 %v5866_v7, %v5865_v42  ;;  %v2439_v60 = vadd.f32 %v5870_v54, %v2196_v4  ;;  %v2441_v1 = vadd.f32 %v5875_v43, %v2198_v56 }
 0x41d   :  { %v3190_v37 = vsel %vm3158_vm6, %v3142_v5, %v3174_v39  ;;  %vm3157_vm7 = vcmp.ge.f32.partialorder %v3141_v9, 0.0  ;;  %v3173_v3 = vmul.f32 0.2, %v3141_v9  ;;  %v3144_v62 = vadd.f32 %v3882_v48, %v2901_v49 }
 0x41e   :  { %3206 = vst.msk [vmem:[%s5758_s5 + $0x18] sm:$0xff] %vm871_vm2, %v3190_v37  ;;  %v3080_v53 = vpop.f32.mrf.mxu0  ;;  %v3862_v36 = vpop.f32.mrf.mxu1  ;;  %v2902_v13 = vadd.f32 %v2847_v47, %v2675_v12  ;;  %v2436_v5 = vadd.f32 %v5867_v59, %v2193_v28  ;;  %v5873_v12 = vld [vmem:[#allocation21_spill] sm:$0xff]  ;;  %v2197_v21 = vadd.f32 %v5874_v34, %v1970_v57  ;;  %v2684_v33 = vadd.f32 %v5628_v44, %v2441_v1 }
 0x41f   :  { %v3189_v41 = vsel %vm3157_vm7, %v3141_v9, %v3173_v3  ;;  %vm3160_vm8 = vcmp.ge.f32.partialorder %v3144_v62, 0.0  ;;  %v3176_v16 = vmul.f32 0.2, %v3144_v62  ;;  %v3143_v55 = vadd.f32 %v3080_v53, %v2900_v27  ;;  %v5869_v9 = vld [vmem:[#allocation9_spill] sm:$0xff]  ;;  %v5871_v27 = vld [vmem:[#allocation22_spill] sm:$0xff] }
 0x420   :  { %3205 = vst.msk [vmem:[%s5758_s5 + $0x10] sm:$0xff] %vm871_vm2, %v3189_v41  ;;  %v3885_v46 = vpop.f32.mrf.mxu0  ;;  %v2857_v20 = vpop.f32.mrf.mxu1  ;;  %v2905_v18 = vadd.f32 %v3862_v36, %v2678_v31  ;;  %v2195_v63 = vadd.f32 %v5869_v9, %v1968_v26  ;;  %v2679_v48 = vadd.f32 %v5871_v27, %v2436_v5 }
 0x421   :  { %v3192_v23 = vsel %vm3160_vm8, %v3144_v62, %v3176_v16  ;;  %vm3159_vm9 = vcmp.ge.f32.partialorder %v3143_v55, 0.0  ;;  %v3175_v38 = vmul.f32 0.2, %v3143_v55  ;;  %v3146_v0 = vadd.f32 %v3885_v46, %v2903_v58 }
 0x422   :  { %3208 = vst.msk [vmem:[%s5758_s5 + $0x28] sm:$0xff] %vm871_vm2, %v3192_v23  ;;  %v3090_v17 = vpop.f32.mrf.mxu0  ;;  %v3865_v2 = vpop.f32.mrf.mxu1  ;;  %v2904_v25 = vadd.f32 %v2857_v20, %v2677_v50  ;;  %v2438_v26 = vadd.f32 %v5873_v12, %v2195_v63  ;;  %v2682_v58 = vadd.f32 %v5610_v19, %v2439_v60 }
 0x423   :  { %v3191_v35 = vsel %vm3159_vm9, %v3143_v55, %v3175_v38  ;;  %vm3162_vm10 = vcmp.ge.f32.partialorder %v3146_v0, 0.0  ;;  %v3178_v8 = vmul.f32 0.2, %v3146_v0  ;;  %v3145_v52 = vadd.f32 %v3090_v17, %v2902_v13  ;;  %v5876_v38 = vld [vmem:[#allocation24_spill] sm:$0xff] }
 0x424   :  { %3207 = vst.msk [vmem:[%s5758_s5 + $0x20] sm:$0xff] %vm871_vm2, %v3191_v35  ;;  %v3888_v49 = vpop.f32.mrf.mxu0  ;;  %v2867_v40 = vpop.f32.mrf.mxu1  ;;  %v2907_v47 = vadd.f32 %v3865_v2, %v2680_v15  ;;  %v2681_v14 = vadd.f32 %v5618_v22, %v2438_v26 }
 0x425   :  { %v3194_v29 = vsel %vm3162_vm10, %v3146_v0, %v3178_v8  ;;  %vm3161_vm11 = vcmp.ge.f32.partialorder %v3145_v52, 0.0  ;;  %v3177_v51 = vmul.f32 0.2, %v3145_v52  ;;  %v3148_v39 = vadd.f32 %v3888_v49, %v2905_v18 }
 0x426   :  { %3210 = vst.msk [vmem:[%s5758_s5 + $0x38] sm:$0xff] %vm871_vm2, %v3194_v29  ;;  %v3100_v37 = vpop.f32.mrf.mxu0  ;;  %v3868_v3 = vpop.f32.mrf.mxu1  ;;  %v2906_v53 = vadd.f32 %v2867_v40, %v2679_v48  ;;  %v2440_v0 = vadd.f32 %v5876_v38, %v2197_v21 }
 0x427   :  { %v3193_v62 = vsel %vm3161_vm11, %v3145_v52, %v3177_v51  ;;  %vm3164_vm12 = vcmp.ge.f32.partialorder %v3148_v39, 0.0  ;;  %v3180_v32 = vmul.f32 0.2, %v3148_v39  ;;  %v3147_v28 = vadd.f32 %v3100_v37, %v2904_v25 }
 0x428   :  { %3209 = vst.msk [vmem:[%s5758_s5 + $0x30] sm:$0xff] %vm871_vm2, %v3193_v62  ;;  %v3891_v36 = vpop.f32.mrf.mxu0  ;;  %v2877_v41 = vpop.f32.mrf.mxu1  ;;  %v2909_v19 = vadd.f32 %v3868_v3, %v2682_v58  ;;  %v2683_v18 = vadd.f32 %v5639_v45, %v2440_v0 }
 0x429   :  { %v3196_v16 = vsel %vm3164_vm12, %v3148_v39, %v3180_v32  ;;  %vm3163_vm13 = vcmp.ge.f32.partialorder %v3147_v28, 0.0  ;;  %v3179_v55 = vmul.f32 0.2, %v3147_v28  ;;  %v3150_v24 = vadd.f32 %v3891_v36, %v2907_v47 }
 0x42a   :  { %3212 = vst.msk [vmem:[%s5758_s5 + $0x48] sm:$0xff] %vm871_vm2, %v3196_v16  ;;  %v3110_v31 = vpop.f32.mrf.mxu0  ;;  %v3871_v13 = vpop.f32.mrf.mxu1  ;;  %v2908_v22 = vadd.f32 %v2877_v41, %v2681_v14 }
 0x42b   :  { %v3195_v46 = vsel %vm3163_vm13, %v3147_v28, %v3179_v55  ;;  %vm3166_vm14 = vcmp.ge.f32.partialorder %v3150_v24, 0.0  ;;  %v3182_v20 = vmul.f32 0.2, %v3150_v24  ;;  %v3149_v23 = vadd.f32 %v3110_v31, %v2906_v53 }
 0x42c   :  { %3211 = vst.msk [vmem:[%s5758_s5 + $0x40] sm:$0xff] %vm871_vm2, %v3195_v46  ;;  %v3894_v4 = vpop.f32.mrf.mxu0  ;;  %v2887_v50 = vpop.f32.mrf.mxu1  ;;  %v2911_v44 = vadd.f32 %v3871_v13, %v2684_v33 }
 0x42d   :  { %v3198_v61 = vsel %vm3166_vm14, %v3150_v24, %v3182_v20  ;;  %vm3165_vm15 = vcmp.ge.f32.partialorder %v3149_v23, 0.0  ;;  %v3181_v11 = vmul.f32 0.2, %v3149_v23  ;;  %v3152_v30 = vadd.f32 %v3894_v4, %v2909_v19 }
 0x42e   :  { %3214 = vst.msk [vmem:[%s5758_s5 + $0x58] sm:$0xff] %vm871_vm2, %v3198_v61  ;;  %v3120_v17 = vpop.f32.mrf.mxu0  ;;  %v2910_v52 = vadd.f32 %v2887_v50, %v2683_v18 }
 0x42f   :  { %v3197_v2 = vsel %vm3165_vm15, %v3149_v23, %v3181_v11  ;;  %vm3168_vm0 = vcmp.ge.f32.partialorder %v3152_v30, 0.0  ;;  %v3184_v35 = vmul.f32 0.2, %v3152_v30  ;;  %v3151_v8 = vadd.f32 %v3120_v17, %v2908_v22 }
 0x430   :  { %3213 = vst.msk [vmem:[%s5758_s5 + $0x50] sm:$0xff] %vm871_vm2, %v3197_v2  ;;  %v3897_v42 = vpop.f32.mrf.mxu0 }
 0x431   :  { %v3200_v7 = vsel %vm3168_vm0, %v3152_v30, %v3184_v35  ;;  %vm3167_vm1 = vcmp.ge.f32.partialorder %v3151_v8, 0.0  ;;  %v3183_v45 = vmul.f32 0.2, %v3151_v8  ;;  %v3154_v57 = vadd.f32 %v3897_v42, %v2911_v44 }
 0x432   :  { %3216 = vst.msk [vmem:[%s5758_s5 + $0x68] sm:$0xff] %vm871_vm2, %v3200_v7  ;;  %v3130_v59 = vpop.f32.mrf.mxu0 }
 0x433   :  { %v3199_v5 = vsel %vm3167_vm1, %v3151_v8, %v3183_v45  ;;  %vm3170_vm3 = vcmp.ge.f32.partialorder %v3154_v57, 0.0  ;;  %v3186_v10 = vmul.f32 0.2, %v3154_v57  ;;  %v3153_v15 = vadd.f32 %v3130_v59, %v2910_v52 }
 0x434   :  { %3215 = vst.msk [vmem:[%s5758_s5 + $0x60] sm:$0xff] %vm871_vm2, %v3199_v5 }
 0x435   :  { %v3202_v25 = vsel %vm3170_vm3, %v3154_v57, %v3186_v10  ;;  %vm3169_vm4 = vcmp.ge.f32.partialorder %v3153_v15, 0.0  ;;  %v3185_v49 = vmul.f32 0.2, %v3153_v15 }
 0x436   :  { %3218 = vst.msk [vmem:[%s5758_s5 + $0x78] sm:$0xff] %vm871_vm2, %v3202_v25 }
 0x437   :  { %v3201_v40 = vsel %vm3169_vm4, %v3153_v15, %v3185_v49 }
 0x438   :  { %3217 = vst.msk [vmem:[%s5758_s5 + $0x70] sm:$0xff] %vm871_vm2, %v3201_v40 }

</bundles_post_ra>
